<compile_context>
chip_gen: v7x
topology: tpu7x:2x2x1
jax: 0.10.0
libtpu: 0.0.40
codegen_flags: <defaults>
</compile_context>

<pallas_src>
import functools

import jax
import jax.numpy as jnp
from jax.experimental import pallas as pl
from jax.experimental.pallas import tpu as pltpu


# ---------------------------------------------------------------------------
# Spike activations (forward of the torch autograd functions)
# ---------------------------------------------------------------------------
def _multispike(x):
    # Multispike:  floor(clamp(4*x, 0, 4) + 0.5) / 4  -> multiples of 0.25 in [0, 1]
    return jnp.floor(jnp.clip(4.0 * x, 0.0, 4.0) + 0.5) * 0.25


def _multispike_att(x):
    # Multispike_att:  floor(clamp(4*x, 0, 4) + 0.5) / 2  -> multiples of 0.5 in [0, 2]
    return jnp.floor(jnp.clip(4.0 * x, 0.0, 4.0) + 0.5) * 0.5


# ---------------------------------------------------------------------------
# Kernel 1: head_lif + fused qkv conv + q/k/v lif + spiking attention
# ---------------------------------------------------------------------------
def _attn_kernel(x_ref, wqkv_ref, y_ref, *, C, N, tb_blk):
    w = wqkv_ref[...]                                        # (3C, C) f32, resident
    # Lane-pack the tb_blk (C, N) tiles into one (C, tb_blk*N) slab.
    tiles = [x_ref[t] for t in range(tb_blk)]
    slab = tiles[0] if tb_blk == 1 else jnp.concatenate(tiles, axis=1)
    xs = _multispike(slab)                                   # head_lif (exact spikes)
    qkv = jnp.dot(w, xs, preferred_element_type=jnp.float32)  # ONE MXU matmul / step
    q = _multispike(qkv[:C, :])
    k = _multispike(qkv[C:2 * C, :])
    v = _multispike(qkv[2 * C:, :])
    prod = k * v
    for t in range(tb_blk):                                  # static, small (<= 16)
        lo, hi = t * N, (t + 1) * N
        # torch.sum(k*v, dim=N, keepdim=True): heads partition the channel axis, so
        # this is an elementwise product reduced over the spatial (lane) segment.
        kv = jnp.sum(prod[:, lo:hi], axis=1, keepdims=True)  # (C, 1)
        y_ref[t] = _multispike_att(kv) + q[:, lo:hi]         # attn broadcast over N


# ---------------------------------------------------------------------------
# Kernel 2: proj 1x1 conv with folded BatchNorm
# ---------------------------------------------------------------------------
def _proj_kernel(m_ref, wp_ref, shift_ref, o_ref, *, N, tb_blk):
    w = wp_ref[...]                                          # (C, C), BN scale folded
    b = shift_ref[...]                                       # (C, 1), BN shift
    tiles = [m_ref[t] for t in range(tb_blk)]
    slab = tiles[0] if tb_blk == 1 else jnp.concatenate(tiles, axis=1)
    out = jnp.dot(w, slab, preferred_element_type=jnp.float32) + b
    for t in range(tb_blk):
        o_ref[t] = out[:, t * N:(t + 1) * N]


# ---------------------------------------------------------------------------
# Chip-aware block selection
# ---------------------------------------------------------------------------
def _tpu_resources():
    """Conservative chip introspection (never raises; kernel path has no fallback)."""
    vmem_bytes = 64 * 1024 * 1024        # smallest per-core VMEM across v5e/v6e/v7x
    num_cores = 1
    try:
        info = pltpu.get_tpu_info()
        vmem_bytes = int(getattr(info, "vmem_capacity_bytes", vmem_bytes))
    except Exception:
        pass
    try:
        num_cores = int(getattr(jax.devices()[0], "num_cores", 1) or 1)
    except Exception:
        pass
    return vmem_bytes, num_cores


def _pick_tb_block(TB, C, N, vmem_bytes, num_cores):
    """(t,b) elements per grid step: VMEM-aware, multi-core aware."""
    # Per-element footprint estimate (f32): double-buffered in+out blocks plus the
    # in-kernel live slab (xs, qkv, q, k, v, k*v ~= 9*C*N floats).
    per_elem = (2 * 2 * C * N + 9 * C * N) * 4
    budget = max(vmem_bytes // 4, 4 * 1024 * 1024)
    max_blk = max(1, min(TB, budget // max(per_elem, 1), 16))
    divisors = [d for d in range(1, TB + 1) if TB % d == 0 and d <= max_blk]
    if num_cores > 1:
        balanced = [d for d in divisors if (TB // d) % num_cores == 0]
        if balanced:
            return max(balanced)      # even split across TensorCores (v7x)
    return max(divisors)              # single core: fewest, largest steps


# ---------------------------------------------------------------------------
# Forward pass
# ---------------------------------------------------------------------------
@functools.partial(jax.jit, static_argnames=("num_heads",))
def sdsa1_forward(x, wq, wk, wv, wp, bn_scale, bn_shift, num_heads):
    T, B, C, H, W = x.shape
    assert C % num_heads == 0
    N = H * W
    TB = T * B
    hd = C // num_heads

    # NCHW -> (TB, C, N): metadata-only reshape, keeps the channels-first HBM layout.
    x_cn = x.reshape(TB, C, N)

    # Weight prep: concat q/k/v convs into one (3C, C) matrix; fold the BN scale into
    # the proj conv, keep the BN shift as a (C, 1) bias.  Weights stay f32 (exactness
    # matters in front of the hard spike quantizers).
    wqkv = jnp.concatenate([wq, wk, wv], axis=0)
    wp_s = bn_scale.reshape(C, 1) * wp
    shift = bn_shift.reshape(C, 1)

    vmem_bytes, num_cores = _tpu_resources()
    tb_blk = _pick_tb_block(TB, C, N, vmem_bytes, num_cores)
    grid = (TB // tb_blk,)
    cparams = pltpu.CompilerParams(dimension_semantics=("parallel",))

    act_spec = pl.BlockSpec((tb_blk, C, N), lambda i: (i, 0, 0))
    wqkv_spec = pl.BlockSpec((3 * C, C), lambda i: (0, 0))
    wp_spec = pl.BlockSpec((C, C), lambda i: (0, 0))
    shift_spec = pl.BlockSpec((C, 1), lambda i: (0, 0))
    act_sds = jax.ShapeDtypeStruct((TB, C, N), jnp.float32)

    # Kernel 1: spiking attention on channels-first (C, N) tiles.
    y = pl.pallas_call(
        functools.partial(_attn_kernel, C=C, N=N, tb_blk=tb_blk),
        out_shape=act_sds,
        grid=grid,
        in_specs=[act_spec, wqkv_spec],
        out_specs=act_spec,
        compiler_params=cparams,
    )(x_cn, wqkv)

    # Torch's `.reshape(T, B, C, H, W)` head mix as a single XLA permutation.
    mixed = y.reshape(TB, num_heads, hd, N).swapaxes(2, 3).reshape(TB, C, N)

    # Kernel 2: proj conv + folded BatchNorm.
    out_cn = pl.pallas_call(
        functools.partial(_proj_kernel, N=N, tb_blk=tb_blk),
        out_shape=act_sds,
        grid=grid,
        in_specs=[act_spec, wp_spec, shift_spec],
        out_specs=act_spec,
        compiler_params=cparams,
    )(mixed, wp_s, shift)

    # (TB, C, N) -> (T, B, C, H, W): metadata-only reshape.
    return out_cn.reshape(T, B, C, H, W)


# ---------------------------------------------------------------------------
# Pure-JAX reference (same inference-mode BN folding), for the self-check.
# ---------------------------------------------------------------------------
def _sdsa1_reference(x, wq, wk, wv, wp, bn_scale, bn_shift, num_heads):
    T, B, C, H, W = x.shape
    N = H * W
    hd = C // num_heads
    hp = jax.lax.Precision.HIGHEST
    xs = _multispike(x.reshape(T * B, C, N))
    q = _multispike(jnp.einsum("oc,bcn->bon", wq, xs, precision=hp))
    k = _multispike(jnp.einsum("oc,bcn->bon", wk, xs, precision=hp))
    v = _multispike(jnp.einsum("oc,bcn->bon", wv, xs, precision=hp))
    qh = q.reshape(T * B, num_heads, hd, N)
    kh = k.reshape(T * B, num_heads, hd, N)
    vh = v.reshape(T * B, num_heads, hd, N)
    kv = jnp.sum(kh * vh, axis=3, keepdims=True)              # sum over N
    y = _multispike_att(kv) + qh                               # (TB, heads, hd, N)
    mixed = jnp.swapaxes(y, 2, 3).reshape(T * B, C, N)         # torch head-mix reshape
    wp_s = bn_scale.reshape(C, 1) * wp
    out = jnp.einsum("oc,bcn->bon", wp_s, mixed, precision=hp) + bn_shift.reshape(1, C, 1)
    return out.reshape(T, B, C, H, W)


if __name__ == "__main__":
    T, B, C, H, W = 2, 2, 32, 16, 16          # N = H*W = 256 -> lane-dense stores
    num_heads = 8

    key = jax.random.PRNGKey(0)
    k_x, k_q, k_k, k_v, k_p = jax.random.split(key, 5)

    x = jax.random.normal(k_x, (T, B, C, H, W), dtype=jnp.float32)

    def conv_w(k):
        # 1x1 conv weights (Cout, Cin), no bias; snapped to bf16-representable values
        # (scaled by a power of two) so the hard spike quantizers see bit-identical
        # pre-activations in the kernel and the XLA reference.
        w = jax.random.normal(k, (C, C), dtype=jnp.float32)
        return w.astype(jnp.bfloat16).astype(jnp.float32) * 0.125

    wq, wk, wv, wp = conv_w(k_q), conv_w(k_k), conv_w(k_v), conv_w(k_p)

    # BatchNorm2d default params (inference mode) folded into scale / shift.
    eps = 1e-5
    gamma = jnp.ones((C,), jnp.float32)
    beta = jnp.zeros((C,), jnp.float32)
    running_mean = jnp.zeros((C,), jnp.float32)
    running_var = jnp.ones((C,), jnp.float32)
    inv_std = gamma / jnp.sqrt(running_var + eps)
    bn_scale = inv_std
    bn_shift = beta - running_mean * inv_std

    out = sdsa1_forward(x, wq, wk, wv, wp, bn_scale, bn_shift, num_heads=num_heads)
    out = jax.block_until_ready(out)
    assert out.shape == (T, B, C, H, W)
    assert bool(jnp.all(jnp.isfinite(out)))

    # Correctness check against the pure-JAX reference (fraction-based so a spike
    # flipping at an exact floor() boundary due to summation order cannot fail it).
    ref = _sdsa1_reference(x, wq, wk, wv, wp, bn_scale, bn_shift, num_heads)
    err = jnp.abs(out - ref)
    tol = 1e-3 + 1e-3 * jnp.abs(ref)
    frac_ok = float(jnp.mean((err <= tol).astype(jnp.float32)))
    assert frac_ok > 0.99, f"mismatch fraction {1.0 - frac_ok:.5f}"

    print("KERNEL_OK")
</pallas_src>

<mosaic_0001>
module attributes {stable_mosaic.version = 11 : i64} {
  func.func @_attn_kernel(%arg0: i32, %arg1: memref<4x32x256xf32, #tpu.memory_space<vmem>>, %arg2: memref<96x32xf32, #tpu.memory_space<vmem>>, %arg3: memref<4x32x256xf32, #tpu.memory_space<vmem>>) attributes {dimension_semantics = [#tpu.dimension_semantics<parallel>], iteration_bounds = array<i64: 1>, scalar_prefetch = 0 : i64, scratch_operands = 0 : i64, tpu.core_type = #tpu.core_type<tc>, window_params = [{transform_indices = @transform_0, window_bounds = array<i64: 4, 32, 256>}, {pipeline_mode = #tpu.pipeline_mode<synchronous>, transform_indices = @transform_1, window_bounds = array<i64: 96, 32>}, {transform_indices = @transform_2, window_bounds = array<i64: 4, 32, 256>}]} {
    %c0 = arith.constant 0 : index
    %c0_0 = arith.constant 0 : index
    %0 = vector.load %arg2[%c0, %c0_0] : memref<96x32xf32, #tpu.memory_space<vmem>>, vector<96x32xf32>
    %c0_1 = arith.constant 0 : index
    %c0_2 = arith.constant 0 : index
    %c0_3 = arith.constant 0 : index
    %1 = vector.load %arg1[%c0_1, %c0_2, %c0_3] : memref<4x32x256xf32, #tpu.memory_space<vmem>>, vector<1x32x256xf32>
    %2 = vector.shape_cast %1 : vector<1x32x256xf32> to vector<32x256xf32>
    %c1 = arith.constant 1 : index
    %c0_4 = arith.constant 0 : index
    %c0_5 = arith.constant 0 : index
    %3 = vector.load %arg1[%c1, %c0_4, %c0_5] : memref<4x32x256xf32, #tpu.memory_space<vmem>>, vector<1x32x256xf32>
    %4 = vector.shape_cast %3 : vector<1x32x256xf32> to vector<32x256xf32>
    %c2 = arith.constant 2 : index
    %c0_6 = arith.constant 0 : index
    %c0_7 = arith.constant 0 : index
    %5 = vector.load %arg1[%c2, %c0_6, %c0_7] : memref<4x32x256xf32, #tpu.memory_space<vmem>>, vector<1x32x256xf32>
    %6 = vector.shape_cast %5 : vector<1x32x256xf32> to vector<32x256xf32>
    %c3 = arith.constant 3 : index
    %c0_8 = arith.constant 0 : index
    %c0_9 = arith.constant 0 : index
    %7 = vector.load %arg1[%c3, %c0_8, %c0_9] : memref<4x32x256xf32, #tpu.memory_space<vmem>>, vector<1x32x256xf32>
    %8 = vector.shape_cast %7 : vector<1x32x256xf32> to vector<32x256xf32>
    %9 = tpu.concatenate %2, %4, %6, %8 in 1 : vector<32x256xf32>, vector<32x256xf32>, vector<32x256xf32>, vector<32x256xf32> -> vector<32x1024xf32>
    %cst = arith.constant 4.000000e+00 : f32
    %10 = vector.broadcast %cst : f32 to vector<32x1024xf32>
    %11 = arith.mulf %10, %9 : vector<32x1024xf32>
    %cst_10 = arith.constant 0.000000e+00 : f32
    %cst_11 = arith.constant 4.000000e+00 : f32
    %12 = vector.broadcast %cst_10 : f32 to vector<32x1024xf32>
    %13 = arith.maximumf %12, %11 : vector<32x1024xf32>
    %14 = vector.broadcast %cst_11 : f32 to vector<32x1024xf32>
    %15 = arith.minimumf %14, %13 : vector<32x1024xf32>
    %cst_12 = arith.constant 5.000000e-01 : f32
    %16 = vector.broadcast %cst_12 : f32 to vector<32x1024xf32>
    %17 = arith.addf %15, %16 : vector<32x1024xf32>
    %18 = math.floor %17 : vector<32x1024xf32>
    %cst_13 = arith.constant 2.500000e-01 : f32
    %19 = vector.broadcast %cst_13 : f32 to vector<32x1024xf32>
    %20 = arith.mulf %18, %19 : vector<32x1024xf32>
    %cst_14 = arith.constant dense<0.000000e+00> : vector<96x1024xf32>
    %21 = tpu.matmul %0, %20, %cst_14 {dimension_numbers = #tpu.dot_dimension_numbers<[1], [0], [0], [1], [0, 0, 1, 1], [], []>} : vector<96x32xf32>, vector<32x1024xf32>, vector<96x1024xf32> -> vector<96x1024xf32>
    %22 = vector.extract_strided_slice %21 {offsets = [0, 0], sizes = [32, 1024], strides = [1, 1]} : vector<96x1024xf32> to vector<32x1024xf32>
    %cst_15 = arith.constant 4.000000e+00 : f32
    %23 = vector.broadcast %cst_15 : f32 to vector<32x1024xf32>
    %24 = arith.mulf %23, %22 : vector<32x1024xf32>
    %cst_16 = arith.constant 0.000000e+00 : f32
    %cst_17 = arith.constant 4.000000e+00 : f32
    %25 = vector.broadcast %cst_16 : f32 to vector<32x1024xf32>
    %26 = arith.maximumf %25, %24 : vector<32x1024xf32>
    %27 = vector.broadcast %cst_17 : f32 to vector<32x1024xf32>
    %28 = arith.minimumf %27, %26 : vector<32x1024xf32>
    %cst_18 = arith.constant 5.000000e-01 : f32
    %29 = vector.broadcast %cst_18 : f32 to vector<32x1024xf32>
    %30 = arith.addf %28, %29 : vector<32x1024xf32>
    %31 = math.floor %30 : vector<32x1024xf32>
    %cst_19 = arith.constant 2.500000e-01 : f32
    %32 = vector.broadcast %cst_19 : f32 to vector<32x1024xf32>
    %33 = arith.mulf %31, %32 : vector<32x1024xf32>
    %34 = vector.extract_strided_slice %21 {offsets = [32, 0], sizes = [32, 1024], strides = [1, 1]} : vector<96x1024xf32> to vector<32x1024xf32>
    %cst_20 = arith.constant 4.000000e+00 : f32
    %35 = vector.broadcast %cst_20 : f32 to vector<32x1024xf32>
    %36 = arith.mulf %35, %34 : vector<32x1024xf32>
    %cst_21 = arith.constant 0.000000e+00 : f32
    %cst_22 = arith.constant 4.000000e+00 : f32
    %37 = vector.broadcast %cst_21 : f32 to vector<32x1024xf32>
    %38 = arith.maximumf %37, %36 : vector<32x1024xf32>
    %39 = vector.broadcast %cst_22 : f32 to vector<32x1024xf32>
    %40 = arith.minimumf %39, %38 : vector<32x1024xf32>
    %cst_23 = arith.constant 5.000000e-01 : f32
    %41 = vector.broadcast %cst_23 : f32 to vector<32x1024xf32>
    %42 = arith.addf %40, %41 : vector<32x1024xf32>
    %43 = math.floor %42 : vector<32x1024xf32>
    %cst_24 = arith.constant 2.500000e-01 : f32
    %44 = vector.broadcast %cst_24 : f32 to vector<32x1024xf32>
    %45 = arith.mulf %43, %44 : vector<32x1024xf32>
    %46 = vector.extract_strided_slice %21 {offsets = [64, 0], sizes = [32, 1024], strides = [1, 1]} : vector<96x1024xf32> to vector<32x1024xf32>
    %cst_25 = arith.constant 4.000000e+00 : f32
    %47 = vector.broadcast %cst_25 : f32 to vector<32x1024xf32>
    %48 = arith.mulf %47, %46 : vector<32x1024xf32>
    %cst_26 = arith.constant 0.000000e+00 : f32
    %cst_27 = arith.constant 4.000000e+00 : f32
    %49 = vector.broadcast %cst_26 : f32 to vector<32x1024xf32>
    %50 = arith.maximumf %49, %48 : vector<32x1024xf32>
    %51 = vector.broadcast %cst_27 : f32 to vector<32x1024xf32>
    %52 = arith.minimumf %51, %50 : vector<32x1024xf32>
    %cst_28 = arith.constant 5.000000e-01 : f32
    %53 = vector.broadcast %cst_28 : f32 to vector<32x1024xf32>
    %54 = arith.addf %52, %53 : vector<32x1024xf32>
    %55 = math.floor %54 : vector<32x1024xf32>
    %cst_29 = arith.constant 2.500000e-01 : f32
    %56 = vector.broadcast %cst_29 : f32 to vector<32x1024xf32>
    %57 = arith.mulf %55, %56 : vector<32x1024xf32>
    %58 = arith.mulf %45, %57 : vector<32x1024xf32>
    %59 = vector.extract_strided_slice %58 {offsets = [0, 0], sizes = [32, 256], strides = [1, 1]} : vector<32x1024xf32> to vector<32x256xf32>
    %cst_30 = arith.constant dense<0.000000e+00> : vector<32xf32>
    %60 = vector.multi_reduction <add>, %59, %cst_30 [1] : vector<32x256xf32> to vector<32xf32>
    %61 = vector.shape_cast %60 : vector<32xf32> to vector<32x1xf32>
    %cst_31 = arith.constant 4.000000e+00 : f32
    %62 = vector.broadcast %cst_31 : f32 to vector<32x1xf32>
    %63 = arith.mulf %62, %61 : vector<32x1xf32>
    %cst_32 = arith.constant 0.000000e+00 : f32
    %cst_33 = arith.constant 4.000000e+00 : f32
    %64 = vector.broadcast %cst_32 : f32 to vector<32x1xf32>
    %65 = arith.maximumf %64, %63 : vector<32x1xf32>
    %66 = vector.broadcast %cst_33 : f32 to vector<32x1xf32>
    %67 = arith.minimumf %66, %65 : vector<32x1xf32>
    %cst_34 = arith.constant 5.000000e-01 : f32
    %68 = vector.broadcast %cst_34 : f32 to vector<32x1xf32>
    %69 = arith.addf %67, %68 : vector<32x1xf32>
    %70 = math.floor %69 : vector<32x1xf32>
    %cst_35 = arith.constant 5.000000e-01 : f32
    %71 = vector.broadcast %cst_35 : f32 to vector<32x1xf32>
    %72 = arith.mulf %70, %71 : vector<32x1xf32>
    %73 = vector.extract_strided_slice %33 {offsets = [0, 0], sizes = [32, 256], strides = [1, 1]} : vector<32x1024xf32> to vector<32x256xf32>
    %74 = vector.broadcast %72 : vector<32x1xf32> to vector<32x256xf32>
    %75 = arith.addf %74, %73 : vector<32x256xf32>
    %c0_36 = arith.constant 0 : index
    %c0_37 = arith.constant 0 : index
    %c0_38 = arith.constant 0 : index
    %76 = vector.load %arg3[%c0_36, %c0_37, %c0_38] : memref<4x32x256xf32, #tpu.memory_space<vmem>>, vector<1x32x256xf32>
    %77 = vector.shape_cast %76 : vector<1x32x256xf32> to vector<32x256xf32>
    %78 = vector.shape_cast %75 : vector<32x256xf32> to vector<1x32x256xf32>
    tpu.vector_store %arg3[%c0_36, %c0_37, %c0_38], %78 {strides = array<i32>} : memref<4x32x256xf32, #tpu.memory_space<vmem>>, vector<1x32x256xf32>,
    %79 = vector.extract_strided_slice %58 {offsets = [0, 256], sizes = [32, 256], strides = [1, 1]} : vector<32x1024xf32> to vector<32x256xf32>
    %cst_39 = arith.constant dense<0.000000e+00> : vector<32xf32>
    %80 = vector.multi_reduction <add>, %79, %cst_39 [1] : vector<32x256xf32> to vector<32xf32>
    %81 = vector.shape_cast %80 : vector<32xf32> to vector<32x1xf32>
    %cst_40 = arith.constant 4.000000e+00 : f32
    %82 = vector.broadcast %cst_40 : f32 to vector<32x1xf32>
    %83 = arith.mulf %82, %81 : vector<32x1xf32>
    %cst_41 = arith.constant 0.000000e+00 : f32
    %cst_42 = arith.constant 4.000000e+00 : f32
    %84 = vector.broadcast %cst_41 : f32 to vector<32x1xf32>
    %85 = arith.maximumf %84, %83 : vector<32x1xf32>
    %86 = vector.broadcast %cst_42 : f32 to vector<32x1xf32>
    %87 = arith.minimumf %86, %85 : vector<32x1xf32>
    %cst_43 = arith.constant 5.000000e-01 : f32
    %88 = vector.broadcast %cst_43 : f32 to vector<32x1xf32>
    %89 = arith.addf %87, %88 : vector<32x1xf32>
    %90 = math.floor %89 : vector<32x1xf32>
    %cst_44 = arith.constant 5.000000e-01 : f32
    %91 = vector.broadcast %cst_44 : f32 to vector<32x1xf32>
    %92 = arith.mulf %90, %91 : vector<32x1xf32>
    %93 = vector.extract_strided_slice %33 {offsets = [0, 256], sizes = [32, 256], strides = [1, 1]} : vector<32x1024xf32> to vector<32x256xf32>
    %94 = vector.broadcast %92 : vector<32x1xf32> to vector<32x256xf32>
    %95 = arith.addf %94, %93 : vector<32x256xf32>
    %c1_45 = arith.constant 1 : index
    %c0_46 = arith.constant 0 : index
    %c0_47 = arith.constant 0 : index
    %96 = vector.load %arg3[%c1_45, %c0_46, %c0_47] : memref<4x32x256xf32, #tpu.memory_space<vmem>>, vector<1x32x256xf32>
    %97 = vector.shape_cast %96 : vector<1x32x256xf32> to vector<32x256xf32>
    %98 = vector.shape_cast %95 : vector<32x256xf32> to vector<1x32x256xf32>
    tpu.vector_store %arg3[%c1_45, %c0_46, %c0_47], %98 {strides = array<i32>} : memref<4x32x256xf32, #tpu.memory_space<vmem>>, vector<1x32x256xf32>,
    %99 = vector.extract_strided_slice %58 {offsets = [0, 512], sizes = [32, 256], strides = [1, 1]} : vector<32x1024xf32> to vector<32x256xf32>
    %cst_48 = arith.constant dense<0.000000e+00> : vector<32xf32>
    %100 = vector.multi_reduction <add>, %99, %cst_48 [1] : vector<32x256xf32> to vector<32xf32>
    %101 = vector.shape_cast %100 : vector<32xf32> to vector<32x1xf32>
    %cst_49 = arith.constant 4.000000e+00 : f32
    %102 = vector.broadcast %cst_49 : f32 to vector<32x1xf32>
    %103 = arith.mulf %102, %101 : vector<32x1xf32>
    %cst_50 = arith.constant 0.000000e+00 : f32
    %cst_51 = arith.constant 4.000000e+00 : f32
    %104 = vector.broadcast %cst_50 : f32 to vector<32x1xf32>
    %105 = arith.maximumf %104, %103 : vector<32x1xf32>
    %106 = vector.broadcast %cst_51 : f32 to vector<32x1xf32>
    %107 = arith.minimumf %106, %105 : vector<32x1xf32>
    %cst_52 = arith.constant 5.000000e-01 : f32
    %108 = vector.broadcast %cst_52 : f32 to vector<32x1xf32>
    %109 = arith.addf %107, %108 : vector<32x1xf32>
    %110 = math.floor %109 : vector<32x1xf32>
    %cst_53 = arith.constant 5.000000e-01 : f32
    %111 = vector.broadcast %cst_53 : f32 to vector<32x1xf32>
    %112 = arith.mulf %110, %111 : vector<32x1xf32>
    %113 = vector.extract_strided_slice %33 {offsets = [0, 512], sizes = [32, 256], strides = [1, 1]} : vector<32x1024xf32> to vector<32x256xf32>
    %114 = vector.broadcast %112 : vector<32x1xf32> to vector<32x256xf32>
    %115 = arith.addf %114, %113 : vector<32x256xf32>
    %c2_54 = arith.constant 2 : index
    %c0_55 = arith.constant 0 : index
    %c0_56 = arith.constant 0 : index
    %116 = vector.load %arg3[%c2_54, %c0_55, %c0_56] : memref<4x32x256xf32, #tpu.memory_space<vmem>>, vector<1x32x256xf32>
    %117 = vector.shape_cast %116 : vector<1x32x256xf32> to vector<32x256xf32>
    %118 = vector.shape_cast %115 : vector<32x256xf32> to vector<1x32x256xf32>
    tpu.vector_store %arg3[%c2_54, %c0_55, %c0_56], %118 {strides = array<i32>} : memref<4x32x256xf32, #tpu.memory_space<vmem>>, vector<1x32x256xf32>,
    %119 = vector.extract_strided_slice %58 {offsets = [0, 768], sizes = [32, 256], strides = [1, 1]} : vector<32x1024xf32> to vector<32x256xf32>
    %cst_57 = arith.constant dense<0.000000e+00> : vector<32xf32>
    %120 = vector.multi_reduction <add>, %119, %cst_57 [1] : vector<32x256xf32> to vector<32xf32>
    %121 = vector.shape_cast %120 : vector<32xf32> to vector<32x1xf32>
    %cst_58 = arith.constant 4.000000e+00 : f32
    %122 = vector.broadcast %cst_58 : f32 to vector<32x1xf32>
    %123 = arith.mulf %122, %121 : vector<32x1xf32>
    %cst_59 = arith.constant 0.000000e+00 : f32
    %cst_60 = arith.constant 4.000000e+00 : f32
    %124 = vector.broadcast %cst_59 : f32 to vector<32x1xf32>
    %125 = arith.maximumf %124, %123 : vector<32x1xf32>
    %126 = vector.broadcast %cst_60 : f32 to vector<32x1xf32>
    %127 = arith.minimumf %126, %125 : vector<32x1xf32>
    %cst_61 = arith.constant 5.000000e-01 : f32
    %128 = vector.broadcast %cst_61 : f32 to vector<32x1xf32>
    %129 = arith.addf %127, %128 : vector<32x1xf32>
    %130 = math.floor %129 : vector<32x1xf32>
    %cst_62 = arith.constant 5.000000e-01 : f32
    %131 = vector.broadcast %cst_62 : f32 to vector<32x1xf32>
    %132 = arith.mulf %130, %131 : vector<32x1xf32>
    %133 = vector.extract_strided_slice %33 {offsets = [0, 768], sizes = [32, 256], strides = [1, 1]} : vector<32x1024xf32> to vector<32x256xf32>
    %134 = vector.broadcast %132 : vector<32x1xf32> to vector<32x256xf32>
    %135 = arith.addf %134, %133 : vector<32x256xf32>
    %c3_63 = arith.constant 3 : index
    %c0_64 = arith.constant 0 : index
    %c0_65 = arith.constant 0 : index
    %136 = vector.load %arg3[%c3_63, %c0_64, %c0_65] : memref<4x32x256xf32, #tpu.memory_space<vmem>>, vector<1x32x256xf32>
    %137 = vector.shape_cast %136 : vector<1x32x256xf32> to vector<32x256xf32>
    %138 = vector.shape_cast %135 : vector<32x256xf32> to vector<1x32x256xf32>
    tpu.vector_store %arg3[%c3_63, %c0_64, %c0_65], %138 {strides = array<i32>} : memref<4x32x256xf32, #tpu.memory_space<vmem>>, vector<1x32x256xf32>,
    return
  }
  func.func @transform_0(%arg0: i32) -> (i32, i32, i32) {
    %c0_i32 = arith.constant 0 : i32
    %c0_i32_0 = arith.constant 0 : i32
    %c0_i32_1 = arith.constant 0 : i32
    return %arg0, %c0_i32, %c0_i32_0 : i32, i32, i32
  }
  func.func @transform_1(%arg0: i32) -> (i32, i32) {
    %c0_i32 = arith.constant 0 : i32
    %c0_i32_0 = arith.constant 0 : i32
    %c0_i32_1 = arith.constant 0 : i32
    return %c0_i32, %c0_i32_0 : i32, i32
  }
  func.func @transform_2(%arg0: i32) -> (i32, i32, i32) {
    %c0_i32 = arith.constant 0 : i32
    %c0_i32_0 = arith.constant 0 : i32
    %c0_i32_1 = arith.constant 0 : i32
    return %arg0, %c0_i32, %c0_i32_0 : i32, i32, i32
  }
}

module attributes {stable_mosaic.version = 11 : i64} {
  func.func @_proj_kernel(%arg0: i32, %arg1: memref<4x32x256xf32, #tpu.memory_space<vmem>>, %arg2: memref<32x32xf32, #tpu.memory_space<vmem>>, %arg3: memref<32x1xf32, #tpu.memory_space<vmem>>, %arg4: memref<4x32x256xf32, #tpu.memory_space<vmem>>) attributes {dimension_semantics = [#tpu.dimension_semantics<parallel>], iteration_bounds = array<i64: 1>, scalar_prefetch = 0 : i64, scratch_operands = 0 : i64, tpu.core_type = #tpu.core_type<tc>, window_params = [{transform_indices = @transform_0, window_bounds = array<i64: 4, 32, 256>}, {pipeline_mode = #tpu.pipeline_mode<synchronous>, transform_indices = @transform_1, window_bounds = array<i64: 32, 32>}, {pipeline_mode = #tpu.pipeline_mode<synchronous>, transform_indices = @transform_2, window_bounds = array<i64: 32, 1>}, {transform_indices = @transform_3, window_bounds = array<i64: 4, 32, 256>}]} {
    %c0 = arith.constant 0 : index
    %c0_0 = arith.constant 0 : index
    %0 = vector.load %arg2[%c0, %c0_0] : memref<32x32xf32, #tpu.memory_space<vmem>>, vector<32x32xf32>
    %c0_1 = arith.constant 0 : index
    %c0_2 = arith.constant 0 : index
    %1 = vector.load %arg3[%c0_1, %c0_2] : memref<32x1xf32, #tpu.memory_space<vmem>>, vector<32x1xf32>
    %c0_3 = arith.constant 0 : index
    %c0_4 = arith.constant 0 : index
    %c0_5 = arith.constant 0 : index
    %2 = vector.load %arg1[%c0_3, %c0_4, %c0_5] : memref<4x32x256xf32, #tpu.memory_space<vmem>>, vector<1x32x256xf32>
    %3 = vector.shape_cast %2 : vector<1x32x256xf32> to vector<32x256xf32>
    %c1 = arith.constant 1 : index
    %c0_6 = arith.constant 0 : index
    %c0_7 = arith.constant 0 : index
    %4 = vector.load %arg1[%c1, %c0_6, %c0_7] : memref<4x32x256xf32, #tpu.memory_space<vmem>>, vector<1x32x256xf32>
    %5 = vector.shape_cast %4 : vector<1x32x256xf32> to vector<32x256xf32>
    %c2 = arith.constant 2 : index
    %c0_8 = arith.constant 0 : index
    %c0_9 = arith.constant 0 : index
    %6 = vector.load %arg1[%c2, %c0_8, %c0_9] : memref<4x32x256xf32, #tpu.memory_space<vmem>>, vector<1x32x256xf32>
    %7 = vector.shape_cast %6 : vector<1x32x256xf32> to vector<32x256xf32>
    %c3 = arith.constant 3 : index
    %c0_10 = arith.constant 0 : index
    %c0_11 = arith.constant 0 : index
    %8 = vector.load %arg1[%c3, %c0_10, %c0_11] : memref<4x32x256xf32, #tpu.memory_space<vmem>>, vector<1x32x256xf32>
    %9 = vector.shape_cast %8 : vector<1x32x256xf32> to vector<32x256xf32>
    %10 = tpu.concatenate %3, %5, %7, %9 in 1 : vector<32x256xf32>, vector<32x256xf32>, vector<32x256xf32>, vector<32x256xf32> -> vector<32x1024xf32>
    %cst = arith.constant dense<0.000000e+00> : vector<32x1024xf32>
    %11 = tpu.matmul %0, %10, %cst {dimension_numbers = #tpu.dot_dimension_numbers<[1], [0], [0], [1], [0, 0, 1, 1], [], []>} : vector<32x32xf32>, vector<32x1024xf32>, vector<32x1024xf32> -> vector<32x1024xf32>
    %12 = vector.broadcast %1 : vector<32x1xf32> to vector<32x1024xf32>
    %13 = arith.addf %11, %12 : vector<32x1024xf32>
    %14 = vector.extract_strided_slice %13 {offsets = [0, 0], sizes = [32, 256], strides = [1, 1]} : vector<32x1024xf32> to vector<32x256xf32>
    %c0_12 = arith.constant 0 : index
    %c0_13 = arith.constant 0 : index
    %c0_14 = arith.constant 0 : index
    %15 = vector.load %arg4[%c0_12, %c0_13, %c0_14] : memref<4x32x256xf32, #tpu.memory_space<vmem>>, vector<1x32x256xf32>
    %16 = vector.shape_cast %15 : vector<1x32x256xf32> to vector<32x256xf32>
    %17 = vector.shape_cast %14 : vector<32x256xf32> to vector<1x32x256xf32>
    tpu.vector_store %arg4[%c0_12, %c0_13, %c0_14], %17 {strides = array<i32>} : memref<4x32x256xf32, #tpu.memory_space<vmem>>, vector<1x32x256xf32>,
    %18 = vector.extract_strided_slice %13 {offsets = [0, 256], sizes = [32, 256], strides = [1, 1]} : vector<32x1024xf32> to vector<32x256xf32>
    %c1_15 = arith.constant 1 : index
    %c0_16 = arith.constant 0 : index
    %c0_17 = arith.constant 0 : index
    %19 = vector.load %arg4[%c1_15, %c0_16, %c0_17] : memref<4x32x256xf32, #tpu.memory_space<vmem>>, vector<1x32x256xf32>
    %20 = vector.shape_cast %19 : vector<1x32x256xf32> to vector<32x256xf32>
    %21 = vector.shape_cast %18 : vector<32x256xf32> to vector<1x32x256xf32>
    tpu.vector_store %arg4[%c1_15, %c0_16, %c0_17], %21 {strides = array<i32>} : memref<4x32x256xf32, #tpu.memory_space<vmem>>, vector<1x32x256xf32>,
    %22 = vector.extract_strided_slice %13 {offsets = [0, 512], sizes = [32, 256], strides = [1, 1]} : vector<32x1024xf32> to vector<32x256xf32>
    %c2_18 = arith.constant 2 : index
    %c0_19 = arith.constant 0 : index
    %c0_20 = arith.constant 0 : index
    %23 = vector.load %arg4[%c2_18, %c0_19, %c0_20] : memref<4x32x256xf32, #tpu.memory_space<vmem>>, vector<1x32x256xf32>
    %24 = vector.shape_cast %23 : vector<1x32x256xf32> to vector<32x256xf32>
    %25 = vector.shape_cast %22 : vector<32x256xf32> to vector<1x32x256xf32>
    tpu.vector_store %arg4[%c2_18, %c0_19, %c0_20], %25 {strides = array<i32>} : memref<4x32x256xf32, #tpu.memory_space<vmem>>, vector<1x32x256xf32>,
    %26 = vector.extract_strided_slice %13 {offsets = [0, 768], sizes = [32, 256], strides = [1, 1]} : vector<32x1024xf32> to vector<32x256xf32>
    %c3_21 = arith.constant 3 : index
    %c0_22 = arith.constant 0 : index
    %c0_23 = arith.constant 0 : index
    %27 = vector.load %arg4[%c3_21, %c0_22, %c0_23] : memref<4x32x256xf32, #tpu.memory_space<vmem>>, vector<1x32x256xf32>
    %28 = vector.shape_cast %27 : vector<1x32x256xf32> to vector<32x256xf32>
    %29 = vector.shape_cast %26 : vector<32x256xf32> to vector<1x32x256xf32>
    tpu.vector_store %arg4[%c3_21, %c0_22, %c0_23], %29 {strides = array<i32>} : memref<4x32x256xf32, #tpu.memory_space<vmem>>, vector<1x32x256xf32>,
    return
  }
  func.func @transform_0(%arg0: i32) -> (i32, i32, i32) {
    %c0_i32 = arith.constant 0 : i32
    %c0_i32_0 = arith.constant 0 : i32
    %c0_i32_1 = arith.constant 0 : i32
    return %arg0, %c0_i32, %c0_i32_0 : i32, i32, i32
  }
  func.func @transform_1(%arg0: i32) -> (i32, i32) {
    %c0_i32 = arith.constant 0 : i32
    %c0_i32_0 = arith.constant 0 : i32
    %c0_i32_1 = arith.constant 0 : i32
    return %c0_i32, %c0_i32_0 : i32, i32
  }
  func.func @transform_2(%arg0: i32) -> (i32, i32) {
    %c0_i32 = arith.constant 0 : i32
    %c0_i32_0 = arith.constant 0 : i32
    %c0_i32_1 = arith.constant 0 : i32
    return %c0_i32, %c0_i32_0 : i32, i32
  }
  func.func @transform_3(%arg0: i32) -> (i32, i32, i32) {
    %c0_i32 = arith.constant 0 : i32
    %c0_i32_0 = arith.constant 0 : i32
    %c0_i32_1 = arith.constant 0 : i32
    return %arg0, %c0_i32, %c0_i32_0 : i32, i32, i32
  }
}

</mosaic_0001>

<bundles_post_ra>
// kernel: sdsa1_forward.3
= control target key start
LH: loop header
LB: loop body
LE: loop exit
PB: predicated region body
PF: predicated region fallthrough
CT: control target
= control target key end

     0   :  { %v585_v3 = vmov 0.0   ;;  %v586_v8 = vmov 0   ;;  %vm77_vm0 = vcmask 261120   ;;  %s875_s0 = inlined_call_operand.vmem [shape: f32[4,32,256], index: 0, kind: input, shape index: {}]   ;;  %s876_s1 = inlined_call_operand.vmem [shape: f32[32,32], index: 1, kind: input, shape index: {}]   ;;  %s877_s2 = inlined_call_operand.vmem [shape: f32[32,1], index: 2, kind: input, shape index: {}]   ;;  %s878_s3 = inlined_call_operand.vmem [shape: f32[4,32,256], index: 3, kind: output, shape index: {}]  }
   0x1   :  { %v23_v0 = vld [vmem:[%s875_s0 + $0x8] sm:$0xff]  ;;  %v25_v1 = vld [vmem:[%s875_s0 + $0x18] sm:$0xff]  ;;  %154 = vmatprep.mubr.f32.mxu0 %v585_v3  ;;  %243 = vmatprep.mubr.f32.mxu1 %v585_v3  ;;  %v22_v6 = vld [vmem:[%s875_s0] sm:$0xff] }
   0x2   :  { %v486_v2 = vld [vmem:[%s875_s0 + $0x48] sm:$0xff]  ;;  %v549_v4 = vpack.c.bf16 %v25_v1, %v23_v0  ;;  %v488_v5 = vld [vmem:[%s875_s0 + $0x58] sm:$0xff]  ;;  %v24_v7 = vld [vmem:[%s875_s0 + $0x10] sm:$0xff]  ;;  %583 = vset.pattern.permute.xlu0 %v586_v8  ;;  %584 = vset.pattern.permute.xlu1 %v586_v8 }
   0x3   :  { %v557_v9 = vpack.c.bf16 %v488_v5, %v486_v2  ;;  %v551_v10 = vpack.c.bf16 %v24_v7, %v22_v6  ;;  %v485_v11 = vld [vmem:[%s875_s0 + $0x40] sm:$0xff]  ;;  %v487_v12 = vld [vmem:[%s875_s0 + $0x50] sm:$0xff]  ;;  %v27_v13 = vld [vmem:[%s875_s0 + $0x28] sm:$0xff] }
   0x4   :  { %550 = vmatprep.subr.bf16.mxu0 %v549_v4  ;;  %v559_v14 = vpack.c.bf16 %v487_v12, %v485_v11  ;;  %v29_v15 = vld [vmem:[%s875_s0 + $0x38] sm:$0xff]  ;;  %v490_v16 = vld [vmem:[%s875_s0 + $0x68] sm:$0xff]  ;;  %v26_v20 = vld [vmem:[%s875_s0 + $0x20] sm:$0xff] }
   0x5   :  { %v492_v17 = vld [vmem:[%s875_s0 + $0x78] sm:$0xff]  ;;  %558 = vmatprep.subr.bf16.mxu1 %v557_v9  ;;  %552 = vmatpush1.bf16.msra.mxu0 %v551_v10  ;;  %v553_v18 = vpack.c.bf16 %v29_v15, %v27_v13  ;;  %v28_v21 = vld [vmem:[%s875_s0 + $0x30] sm:$0xff]  ;;  %v489_v22 = vld [vmem:[%s875_s0 + $0x60] sm:$0xff] }
   0x6   :  { %v561_v19 = vpack.c.bf16 %v492_v17, %v490_v16  ;;  %560 = vmatpush1.bf16.msra.mxu1 %v559_v14  ;;  %v555_v23 = vpack.c.bf16 %v28_v21, %v26_v20  ;;  %v491_v24 = vld [vmem:[%s875_s0 + $0x70] sm:$0xff]  ;;  %v494_v25 = vld [vmem:[%s875_s0 + $0x88] sm:$0xff]  ;;  %v496_v27 = vld [vmem:[%s875_s0 + $0x98] sm:$0xff] }
   0x7   :  { %554 = vmatprep.subr.bf16.mxu0 %v553_v18  ;;  %v563_v26 = vpack.c.bf16 %v491_v24, %v489_v22  ;;  %v502_v28 = vld [vmem:[%s875_s0 + $0xc8] sm:$0xff]  ;;  %v504_v29 = vld [vmem:[%s875_s0 + $0xd8] sm:$0xff]  ;;  %v565_v30 = vpack.c.bf16 %v496_v27, %v494_v25  ;;  %v493_v32 = vld [vmem:[%s875_s0 + $0x80] sm:$0xff] }
   0x8   :  { %562 = vmatprep.subr.bf16.mxu1 %v561_v19  ;;  %v573_v31 = vpack.c.bf16 %v504_v29, %v502_v28  ;;  %v495_v33 = vld [vmem:[%s875_s0 + $0x90] sm:$0xff]  ;;  %v501_v34 = vld [vmem:[%s875_s0 + $0xc0] sm:$0xff]  ;;  %v498_v39 = vld [vmem:[%s875_s0 + $0xa8] sm:$0xff] }
   0x9   :  { %556 = vmatpush1.bf16.msra.mxu0 %v555_v23  ;;  %v14_v35 = vld [vmem:[%s876_s1] sm:$0xff]  ;;  %v567_v36 = vpack.c.bf16 %v495_v33, %v493_v32  ;;  %v503_v37 = vld [vmem:[%s875_s0 + $0xd0] sm:$0xff]  ;;  %v500_v40 = vld [vmem:[%s875_s0 + $0xb8] sm:$0xff] }
   0xa   :  { %564 = vmatpush1.bf16.msra.mxu1 %v563_v26  ;;  %566 = vmatprep.subr.bf16.mxu0 %v565_v30  ;;  %v575_v38 = vpack.c.bf16 %v503_v37, %v501_v34  ;;  %v506_v41 = vld [vmem:[%s875_s0 + $0xe8] sm:$0xff]  ;;  %v569_v42 = vpack.c.bf16 %v500_v40, %v498_v39  ;;  %v508_v43 = vld [vmem:[%s875_s0 + $0xf8] sm:$0xff]  ;;  %v497_v44 = vld [vmem:[%s875_s0 + $0xa0] sm:$0xff] }
   0xb   :  { %574 = vmatprep.subr.bf16.mxu1 %v573_v31  ;;  %v499_v45 = vld [vmem:[%s875_s0 + $0xb0] sm:$0xff]  ;;  %v577_v46 = vpack.c.bf16 %v508_v43, %v506_v41  ;;  %v505_v47 = vld [vmem:[%s875_s0 + $0xe0] sm:$0xff]  ;;  %v15_v49 = vld [vmem:[%s876_s1 + $0x8] sm:$0xff] }
   0xc   :  { %509 = vmatmul.mubr.msk.f32.vlgmr.msra.gmra.mrb[0].mxu0 %vm77_vm0, %v14_v35  ;;  %v507_v48 = vld [vmem:[%s875_s0 + $0xf0] sm:$0xff]  ;;  %v571_v50 = vpack.c.bf16 %v499_v45, %v497_v44  ;;  %v18_v52 = vld [vmem:[%s877_s2] sm:$0xff]  ;;  %v19_v55 = vld [vmem:[%s877_s2 + $0x8] sm:$0xff] }
   0xd   :  { %513 = vmatmul.mubr.msk.f32.vlgmr.msra.gmra.mrb[0].mxu1 %vm77_vm0, %v14_v35  ;;  %568 = vmatpush1.bf16.msra.mxu0 %v567_v36  ;;  %v579_v51 = vpack.c.bf16 %v507_v48, %v505_v47  ;;  %v16_v53 = vld [vmem:[%s876_s1 + $0x10] sm:$0xff]  ;;  %v17_v56 = vld [vmem:[%s876_s1 + $0x18] sm:$0xff] }
   0xe   :  { %576 = vmatpush1.bf16.msra.mxu1 %v575_v38  ;;  %160 = vmatprep.mubr.f32.mxu0 %v585_v3  ;;  %v20_v54 = vld [vmem:[%s877_s2 + $0x10] sm:$0xff]  ;;  %v21_v57 = vld [vmem:[%s877_s2 + $0x18] sm:$0xff] }
   0xf   :  { %249 = vmatprep.mubr.f32.mxu1 %v585_v3  ;;  %570 = vmatprep.subr.bf16.mxu0 %v569_v42 }
  0x10   :  { %510 = vmatmul.mubr.msk.f32.gmra.mrb[2].mxu0 %vm77_vm0, %v15_v49  ;;  %578 = vmatprep.subr.bf16.mxu1 %v577_v46 }
  0x11   :  { %514 = vmatmul.mubr.msk.f32.gmra.mrb[2].mxu1 %vm77_vm0, %v15_v49  ;;  %166 = vmatprep.mubr.f32.mxu0 %v585_v3 }
  0x12   :  { %255 = vmatprep.mubr.f32.mxu1 %v585_v3  ;;  %572 = vmatpush1.bf16.msra.mxu0 %v571_v50 }
  0x13   :  { %580 = vmatpush1.bf16.msra.mxu1 %v579_v51  ;;  %59 = vperm.xlu0 %583, %v18_v52  }
  0x14   :  { %511 = vmatmul.mubr.msk.f32.gmra.mrb[4].mxu0 %vm77_vm0, %v16_v53  ;;  %69 = vperm.xlu1 %584, %v20_v54  }
  0x15   :  { %515 = vmatmul.mubr.msk.f32.gmra.mrb[4].mxu1 %vm77_vm0, %v16_v53  ;;  %172 = vmatprep.mubr.f32.mxu0 %v585_v3 }
  0x16   :  { %261 = vmatprep.mubr.f32.mxu1 %v585_v3 }
  0x17   :  { %64 = vperm.xlu0 %583, %v19_v55  }
  0x18   :  { %512 = vmatmul.mubr.msk.f32.gmra.mrb[6].mxu0 %vm77_vm0, %v17_v56  ;;  %74 = vperm.xlu1 %584, %v21_v57  }
  0x19   :  { %516 = vmatmul.mubr.msk.f32.gmra.mrb[6].mxu1 %vm77_vm0, %v17_v56  ;;  %332 = vmatprep.mubr.f32.mxu0 %v585_v3 }
  0x1a   :  { %421 = vmatprep.mubr.f32.mxu1 %v585_v3 }
  0x1c   :  { %517 = vmatmul.mubr.msk.f32.vlgmr.msra.gmra.mrb[8].mxu0 %vm77_vm0, %v14_v35 }
  0x1d   :  { %521 = vmatmul.mubr.msk.f32.vlgmr.msra.gmra.mrb[8].mxu1 %vm77_vm0, %v14_v35  ;;  %338 = vmatprep.mubr.f32.mxu0 %v585_v3 }
  0x1e   :  { %427 = vmatprep.mubr.f32.mxu1 %v585_v3 }
  0x20   :  { %518 = vmatmul.mubr.msk.f32.gmra.mrb[10].mxu0 %vm77_vm0, %v15_v49 }
  0x21   :  { %522 = vmatmul.mubr.msk.f32.gmra.mrb[10].mxu1 %vm77_vm0, %v15_v49  ;;  %344 = vmatprep.mubr.f32.mxu0 %v585_v3 }
  0x22   :  { %433 = vmatprep.mubr.f32.mxu1 %v585_v3 }
  0x24   :  { %519 = vmatmul.mubr.msk.f32.gmra.mrb[12].mxu0 %vm77_vm0, %v16_v53 }
  0x25   :  { %523 = vmatmul.mubr.msk.f32.gmra.mrb[12].mxu1 %vm77_vm0, %v16_v53  ;;  %350 = vmatprep.mubr.f32.mxu0 %v585_v3 }
  0x26   :  { %439 = vmatprep.mubr.f32.mxu1 %v585_v3 }
  0x28   :  { %520 = vmatmul.mubr.msk.f32.gmra.mrb[14].mxu0 %vm77_vm0, %v17_v56 }
  0x29   :  { %524 = vmatmul.mubr.msk.f32.gmra.mrb[14].mxu1 %vm77_vm0, %v17_v56 }
  0x92   :  { %v60_v58 = vpop.permute.xlu0 %59 }
  0x93   :  { %v770_v5 = vpop.permute.xlu1 %69 }
  0x96   :  { %v759_v2 = vpop.permute.xlu0 %64 }
  0x97   :  { %v75_v20 = vpop.permute.xlu1 %74 }
  0xdf   :  { %v156_v59 = vpop.f32.mrb[0].mxu0 }
  0xe0   :  { %v245_v60 = vpop.f32.mrb[0].mxu1  ;;  %v157_v61 = vadd.f32 %v156_v59, %v60_v58  ;;  %v158_v62 = vpop.f32.mrb[1].mxu0 }
  0xe1   :  { %v246_v63 = vadd.f32 %v245_v60, %v60_v58  ;;  %v159_v0 = vadd.f32 %v158_v62, %v60_v58  ;;  %v247_v1 = vpop.f32.mrb[1].mxu1 }
  0xe2   :  { %446 = vst [vmem:[%s878_s3] sm:$0xff] %v157_v61  ;;  %v248_v4 = vadd.f32 %v247_v1, %v60_v58 }
  0xe3   :  { %525 = vst [vmem:[%s878_s3 + $0x40] sm:$0xff] %v246_v63  ;;  %447 = vst [vmem:[%s878_s3 + $0x8] sm:$0xff] %v159_v0  ;;  %v162_v3 = vpop.f32.mrb[2].mxu0 }
  0xe4   :  { %526 = vst [vmem:[%s878_s3 + $0x48] sm:$0xff] %v248_v4  ;;  %v251_v6 = vpop.f32.mrb[2].mxu1  ;;  %v163_v7 = vadd.f32 %v162_v3, %v759_v2  ;;  %v164_v8 = vpop.f32.mrb[3].mxu0 }
  0xe5   :  { %v252_v9 = vadd.f32 %v251_v6, %v759_v2  ;;  %v165_v10 = vadd.f32 %v164_v8, %v759_v2  ;;  %v253_v11 = vpop.f32.mrb[3].mxu1 }
  0xe6   :  { %448 = vst [vmem:[%s878_s3 + $0x10] sm:$0xff] %v163_v7  ;;  %v254_v12 = vadd.f32 %v253_v11, %v759_v2 }
  0xe7   :  { %527 = vst [vmem:[%s878_s3 + $0x50] sm:$0xff] %v252_v9  ;;  %449 = vst [vmem:[%s878_s3 + $0x18] sm:$0xff] %v165_v10  ;;  %v168_v13 = vpop.f32.mrb[4].mxu0 }
  0xe8   :  { %528 = vst [vmem:[%s878_s3 + $0x58] sm:$0xff] %v254_v12  ;;  %v257_v14 = vpop.f32.mrb[4].mxu1  ;;  %v169_v15 = vadd.f32 %v168_v13, %v770_v5  ;;  %v170_v16 = vpop.f32.mrb[5].mxu0 }
  0xe9   :  { %v258_v17 = vadd.f32 %v257_v14, %v770_v5  ;;  %v171_v18 = vadd.f32 %v170_v16, %v770_v5  ;;  %v259_v19 = vpop.f32.mrb[5].mxu1 }
  0xea   :  { %450 = vst [vmem:[%s878_s3 + $0x20] sm:$0xff] %v169_v15  ;;  %v260_v21 = vadd.f32 %v259_v19, %v770_v5 }
  0xeb   :  { %529 = vst [vmem:[%s878_s3 + $0x60] sm:$0xff] %v258_v17  ;;  %451 = vst [vmem:[%s878_s3 + $0x28] sm:$0xff] %v171_v18  ;;  %v174_v22 = vpop.f32.mrb[6].mxu0 }
  0xec   :  { %530 = vst [vmem:[%s878_s3 + $0x68] sm:$0xff] %v260_v21  ;;  %v263_v23 = vpop.f32.mrb[6].mxu1  ;;  %v175_v24 = vadd.f32 %v174_v22, %v75_v20  ;;  %v176_v25 = vpop.f32.mrb[7].mxu0 }
  0xed   :  { %v264_v26 = vadd.f32 %v263_v23, %v75_v20  ;;  %v177_v27 = vadd.f32 %v176_v25, %v75_v20  ;;  %v265_v28 = vpop.f32.mrb[7].mxu1 }
  0xee   :  { %452 = vst [vmem:[%s878_s3 + $0x30] sm:$0xff] %v175_v24  ;;  %v266_v29 = vadd.f32 %v265_v28, %v75_v20 }
  0xef   :  { %531 = vst [vmem:[%s878_s3 + $0x70] sm:$0xff] %v264_v26  ;;  %453 = vst [vmem:[%s878_s3 + $0x38] sm:$0xff] %v177_v27  ;;  %v334_v30 = vpop.f32.mrb[8].mxu0 }
  0xf0   :  { %532 = vst [vmem:[%s878_s3 + $0x78] sm:$0xff] %v266_v29  ;;  %v335_v31 = vadd.f32 %v334_v30, %v60_v58  ;;  %v423_v32 = vpop.f32.mrb[8].mxu1  ;;  %v336_v33 = vpop.f32.mrb[9].mxu0 }
  0xf1   :  { %v424_v34 = vadd.f32 %v423_v32, %v60_v58  ;;  %v337_v35 = vadd.f32 %v336_v33, %v60_v58  ;;  %v425_v36 = vpop.f32.mrb[9].mxu1 }
  0xf2   :  { %533 = vst [vmem:[%s878_s3 + $0x80] sm:$0xff] %v335_v31  ;;  %v426_v37 = vadd.f32 %v425_v36, %v60_v58 }
  0xf3   :  { %541 = vst [vmem:[%s878_s3 + $0xc0] sm:$0xff] %v424_v34  ;;  %534 = vst [vmem:[%s878_s3 + $0x88] sm:$0xff] %v337_v35  ;;  %v340_v38 = vpop.f32.mrb[10].mxu0 }
  0xf4   :  { %542 = vst [vmem:[%s878_s3 + $0xc8] sm:$0xff] %v426_v37  ;;  %v341_v39 = vadd.f32 %v340_v38, %v759_v2  ;;  %v429_v40 = vpop.f32.mrb[10].mxu1  ;;  %v342_v41 = vpop.f32.mrb[11].mxu0 }
  0xf5   :  { %v430_v42 = vadd.f32 %v429_v40, %v759_v2  ;;  %v343_v43 = vadd.f32 %v342_v41, %v759_v2  ;;  %v431_v44 = vpop.f32.mrb[11].mxu1 }
  0xf6   :  { %535 = vst [vmem:[%s878_s3 + $0x90] sm:$0xff] %v341_v39  ;;  %v432_v45 = vadd.f32 %v431_v44, %v759_v2 }
  0xf7   :  { %543 = vst [vmem:[%s878_s3 + $0xd0] sm:$0xff] %v430_v42  ;;  %536 = vst [vmem:[%s878_s3 + $0x98] sm:$0xff] %v343_v43  ;;  %v346_v46 = vpop.f32.mrb[12].mxu0 }
  0xf8   :  { %544 = vst [vmem:[%s878_s3 + $0xd8] sm:$0xff] %v432_v45  ;;  %v347_v47 = vadd.f32 %v346_v46, %v770_v5  ;;  %v435_v48 = vpop.f32.mrb[12].mxu1  ;;  %v348_v49 = vpop.f32.mrb[13].mxu0 }
  0xf9   :  { %v436_v50 = vadd.f32 %v435_v48, %v770_v5  ;;  %v349_v51 = vadd.f32 %v348_v49, %v770_v5  ;;  %v437_v52 = vpop.f32.mrb[13].mxu1 }
  0xfa   :  { %537 = vst [vmem:[%s878_s3 + $0xa0] sm:$0xff] %v347_v47  ;;  %v438_v53 = vadd.f32 %v437_v52, %v770_v5 }
  0xfb   :  { %545 = vst [vmem:[%s878_s3 + $0xe0] sm:$0xff] %v436_v50  ;;  %538 = vst [vmem:[%s878_s3 + $0xa8] sm:$0xff] %v349_v51  ;;  %v352_v54 = vpop.f32.mrb[14].mxu0 }
  0xfc   :  { %546 = vst [vmem:[%s878_s3 + $0xe8] sm:$0xff] %v438_v53  ;;  %v353_v55 = vadd.f32 %v352_v54, %v75_v20  ;;  %v441_v56 = vpop.f32.mrb[14].mxu1  ;;  %v354_v57 = vpop.f32.mrb[15].mxu0 }
  0xfd   :  { %v442_v58 = vadd.f32 %v441_v56, %v75_v20  ;;  %v355_v59 = vadd.f32 %v354_v57, %v75_v20  ;;  %v443_v60 = vpop.f32.mrb[15].mxu1 }
  0xfe   :  { %539 = vst [vmem:[%s878_s3 + $0xb0] sm:$0xff] %v353_v55  ;;  %v444_v61 = vadd.f32 %v443_v60, %v75_v20 }
  0xff   :  { %547 = vst [vmem:[%s878_s3 + $0xf0] sm:$0xff] %v442_v58  ;;  %540 = vst [vmem:[%s878_s3 + $0xb8] sm:$0xff] %v355_v59 }
 0x100   :  { %548 = vst [vmem:[%s878_s3 + $0xf8] sm:$0xff] %v444_v61 }

// kernel: sdsa1_forward.2
= control target key start
LH: loop header
LB: loop body
LE: loop exit
PB: predicated region body
PF: predicated region fallthrough
CT: control target
= control target key end

     0   :  { %v1787_v3 = vmov 0.0   ;;  %vm250_vm0 = vcmask 261120   ;;  %s2556_s0 = inlined_call_operand.vmem [shape: f32[4,32,256], index: 0, kind: input, shape index: {}]   ;;  %s2557_s1 = inlined_call_operand.vmem [shape: f32[96,32], index: 1, kind: input, shape index: {}]   ;;  %s2558_s2 = inlined_call_operand.vmem [shape: f32[4,32,256], index: 2, kind: output, shape index: {}]  }
   0x1   :  { %v24_v0 = vld [vmem:[%s2556_s0 + $0x8] sm:$0xff]  ;;  %v26_v1 = vld [vmem:[%s2556_s0 + $0x18] sm:$0xff]  ;;  %351 = vmatprep.mubr.f32.mxu0 %v1787_v3  ;;  %488 = vmatprep.mubr.f32.mxu1 %v1787_v3  ;;  %v23_v8 = vld [vmem:[%s2556_s0] sm:$0xff] }
   0x2   :  { %v1659_v2 = vld [vmem:[%s2556_s0 + $0x48] sm:$0xff]  ;;  %v59_v4 = vmul.f32 4.0, %v24_v0  ;;  %v67_v5 = vmul.f32 4.0, %v26_v1  ;;  %v1661_v6 = vld [vmem:[%s2556_s0 + $0x58] sm:$0xff]  ;;  %v25_v9 = vld [vmem:[%s2556_s0 + $0x10] sm:$0xff]  ;;  %v58_v11 = vmul.f32 4.0, %v23_v8 }
   0x3   :  { %v61_v7 = vmul.f32 4.0, %v1659_v2  ;;  %v69_v10 = vmul.f32 4.0, %v1661_v6  ;;  %v66_v12 = vmul.f32 4.0, %v25_v9  ;;  %v1658_v13 = vld [vmem:[%s2556_s0 + $0x40] sm:$0xff]  ;;  %v1660_v14 = vld [vmem:[%s2556_s0 + $0x50] sm:$0xff]  ;;  %v28_v47 = vld [vmem:[%s2556_s0 + $0x28] sm:$0xff] }
   0x4   :  { %v91_v15 = vmax.f32 %v59_v4, 0.0  ;;  %v99_v16 = vmax.f32 %v67_v5, 0.0  ;;  %v60_v18 = vmul.f32 4.0, %v1658_v13  ;;  %v90_v20 = vmax.f32 %v58_v11, 0.0  ;;  %v30_v48 = vld [vmem:[%s2556_s0 + $0x38] sm:$0xff]  ;;  %v1663_v53 = vld [vmem:[%s2556_s0 + $0x68] sm:$0xff] }
   0x5   :  { %v93_v17 = vmax.f32 %v61_v7, 0.0  ;;  %v101_v19 = vmax.f32 %v69_v10, 0.0  ;;  %v98_v21 = vmax.f32 %v66_v12, 0.0  ;;  %v68_v22 = vmul.f32 4.0, %v1660_v14  ;;  %v1665_v58 = vld [vmem:[%s2556_s0 + $0x78] sm:$0xff]  ;;  %v27_v59 = vld [vmem:[%s2556_s0 + $0x20] sm:$0xff] }
   0x6   :  { %v123_v23 = vmin.f32 %v91_v15, 4.0  ;;  %v131_v24 = vmin.f32 %v99_v16, 4.0  ;;  %v92_v26 = vmax.f32 %v60_v18, 0.0  ;;  %v122_v28 = vmin.f32 %v90_v20, 4.0  ;;  %v29_v0 = vld [vmem:[%s2556_s0 + $0x30] sm:$0xff]  ;;  %v1662_v1 = vld [vmem:[%s2556_s0 + $0x60] sm:$0xff] }
   0x7   :  { %v125_v25 = vmin.f32 %v93_v17, 4.0  ;;  %v133_v27 = vmin.f32 %v101_v19, 4.0  ;;  %v130_v29 = vmin.f32 %v98_v21, 4.0  ;;  %v100_v30 = vmax.f32 %v68_v22, 0.0  ;;  %v1664_v11 = vld [vmem:[%s2556_s0 + $0x70] sm:$0xff] }
   0x8   :  { %v155_v31 = vadd.f32 0.5, %v123_v23  ;;  %v163_v32 = vadd.f32 0.5, %v131_v24  ;;  %v124_v34 = vmin.f32 %v92_v26, 4.0  ;;  %v154_v36 = vadd.f32 0.5, %v122_v28 }
   0x9   :  { %v157_v33 = vadd.f32 0.5, %v125_v25  ;;  %v165_v35 = vadd.f32 0.5, %v133_v27  ;;  %v162_v37 = vadd.f32 0.5, %v130_v29  ;;  %v132_v38 = vmin.f32 %v100_v30, 4.0 }
   0xa   :  { %v187_v39 = vfloor.f32 %v155_v31  ;;  %v195_v40 = vfloor.f32 %v163_v32  ;;  %v156_v42 = vadd.f32 0.5, %v124_v34  ;;  %v186_v44 = vfloor.f32 %v154_v36 }
   0xb   :  { %v189_v41 = vfloor.f32 %v157_v33  ;;  %v197_v43 = vfloor.f32 %v165_v35  ;;  %v194_v45 = vfloor.f32 %v162_v37  ;;  %v164_v46 = vadd.f32 0.5, %v132_v38 }
   0xc   :  { %v219_v49 = vmul.f32 0.25, %v187_v39  ;;  %v227_v50 = vmul.f32 0.25, %v195_v40  ;;  %v188_v52 = vfloor.f32 %v156_v42  ;;  %v218_v55 = vmul.f32 0.25, %v186_v44  ;;  %v1667_v40 = vld [vmem:[%s2556_s0 + $0x88] sm:$0xff] }
   0xd   :  { %v221_v51 = vmul.f32 0.25, %v189_v41  ;;  %v229_v54 = vmul.f32 0.25, %v197_v43  ;;  %v226_v56 = vmul.f32 0.25, %v194_v45  ;;  %v196_v57 = vfloor.f32 %v164_v46  ;;  %v1669_v45 = vld [vmem:[%s2556_s0 + $0x98] sm:$0xff] }
   0xe   :  { %v1754_v60 = vpack.c.bf16 %v227_v50, %v219_v49  ;;  %v220_v61 = vmul.f32 0.25, %v188_v52  ;;  %v75_v62 = vmul.f32 4.0, %v28_v47  ;;  %v83_v63 = vmul.f32 4.0, %v30_v48  ;;  %v1666_v50 = vld [vmem:[%s2556_s0 + $0x80] sm:$0xff] }
   0xf   :  { %v1762_v2 = vpack.c.bf16 %v229_v54, %v221_v51  ;;  %v1756_v4 = vpack.c.bf16 %v226_v56, %v218_v55  ;;  %v228_v5 = vmul.f32 0.25, %v196_v57  ;;  %v77_v6 = vmul.f32 4.0, %v1663_v53  ;;  %v1668_v51 = vld [vmem:[%s2556_s0 + $0x90] sm:$0xff]  ;;  %v1675_v56 = vld [vmem:[%s2556_s0 + $0xc8] sm:$0xff] }
  0x10   :  { %1755 = vmatprep.subr.bf16.mxu0 %v1754_v60  ;;  %v107_v7 = vmax.f32 %v75_v62, 0.0  ;;  %v115_v8 = vmax.f32 %v83_v63, 0.0  ;;  %v85_v9 = vmul.f32 4.0, %v1665_v58  ;;  %v74_v10 = vmul.f32 4.0, %v27_v59 }
  0x11   :  { %1763 = vmatprep.subr.bf16.mxu1 %v1762_v2  ;;  %1757 = vmatpush1.bf16.msra.mxu0 %v1756_v4  ;;  %v1764_v12 = vpack.c.bf16 %v228_v5, %v220_v61  ;;  %v109_v13 = vmax.f32 %v77_v6, 0.0  ;;  %v82_v14 = vmul.f32 4.0, %v29_v0  ;;  %v76_v15 = vmul.f32 4.0, %v1662_v1  ;;  %v1677_v61 = vld [vmem:[%s2556_s0 + $0xd8] sm:$0xff]  ;;  %v1674_v2 = vld [vmem:[%s2556_s0 + $0xc0] sm:$0xff] }
  0x12   :  { %v139_v16 = vmin.f32 %v107_v7, 4.0  ;;  %v147_v17 = vmin.f32 %v115_v8, 4.0  ;;  %v117_v18 = vmax.f32 %v85_v9, 0.0  ;;  %v106_v19 = vmax.f32 %v74_v10, 0.0 }
  0x13   :  { %1765 = vmatpush1.bf16.msra.mxu1 %v1764_v12  ;;  %v141_v20 = vmin.f32 %v109_v13, 4.0  ;;  %v114_v21 = vmax.f32 %v82_v14, 0.0  ;;  %v84_v22 = vmul.f32 4.0, %v1664_v11  ;;  %v108_v23 = vmax.f32 %v76_v15, 0.0  ;;  %v1676_v12 = vld [vmem:[%s2556_s0 + $0xd0] sm:$0xff]  ;;  %v1880_v14 = vld [vmem:[%s2557_s1] sm:$0xff] }
  0x14   :  { %v171_v24 = vadd.f32 0.5, %v139_v16  ;;  %v179_v25 = vadd.f32 0.5, %v147_v17  ;;  %v149_v26 = vmin.f32 %v117_v18, 4.0  ;;  %v138_v27 = vmin.f32 %v106_v19, 4.0 }
  0x15   :  { %v173_v28 = vadd.f32 0.5, %v141_v20  ;;  %v146_v29 = vmin.f32 %v114_v21, 4.0  ;;  %v116_v30 = vmax.f32 %v84_v22, 0.0  ;;  %v140_v31 = vmin.f32 %v108_v23, 4.0 }
  0x16   :  { %v203_v32 = vfloor.f32 %v171_v24  ;;  %v211_v33 = vfloor.f32 %v179_v25  ;;  %v181_v34 = vadd.f32 0.5, %v149_v26  ;;  %v170_v35 = vadd.f32 0.5, %v138_v27 }
  0x17   :  { %v205_v36 = vfloor.f32 %v173_v28  ;;  %v178_v37 = vadd.f32 0.5, %v146_v29  ;;  %v148_v38 = vmin.f32 %v116_v30, 4.0  ;;  %v172_v39 = vadd.f32 0.5, %v140_v31  ;;  %v1888_v31 = vld [vmem:[%s2557_s1 + $0x8] sm:$0xff] }
  0x18   :  { %v235_v41 = vmul.f32 0.25, %v203_v32  ;;  %v243_v42 = vmul.f32 0.25, %v211_v33  ;;  %v213_v43 = vfloor.f32 %v181_v34  ;;  %v202_v44 = vfloor.f32 %v170_v35  ;;  %v1671_v35 = vld [vmem:[%s2556_s0 + $0xa8] sm:$0xff] }
  0x19   :  { %v237_v46 = vmul.f32 0.25, %v205_v36  ;;  %v210_v47 = vfloor.f32 %v178_v37  ;;  %v180_v48 = vadd.f32 0.5, %v148_v38  ;;  %v204_v49 = vfloor.f32 %v172_v39 }
  0x1a   :  { %v1758_v52 = vpack.c.bf16 %v243_v42, %v235_v41  ;;  %v245_v53 = vmul.f32 0.25, %v213_v43  ;;  %v234_v54 = vmul.f32 0.25, %v202_v44  ;;  %v63_v55 = vmul.f32 4.0, %v1667_v40  ;;  %v1673_v44 = vld [vmem:[%s2556_s0 + $0xb8] sm:$0xff] }
  0x1b   :  { %v242_v57 = vmul.f32 0.25, %v210_v47  ;;  %v212_v58 = vfloor.f32 %v180_v48  ;;  %v236_v59 = vmul.f32 0.25, %v204_v49  ;;  %v71_v60 = vmul.f32 4.0, %v1669_v45  ;;  %v1670_v49 = vld [vmem:[%s2556_s0 + $0xa0] sm:$0xff] }
  0x1c   :  { %1759 = vmatprep.subr.bf16.mxu0 %v1758_v52  ;;  %v1766_v62 = vpack.c.bf16 %v245_v53, %v237_v46  ;;  %v95_v63 = vmax.f32 %v63_v55, 0.0  ;;  %v62_v0 = vmul.f32 4.0, %v1666_v50  ;;  %v70_v1 = vmul.f32 4.0, %v1668_v51  ;;  %v1672_v50 = vld [vmem:[%s2556_s0 + $0xb0] sm:$0xff]  ;;  %v1679_v55 = vld [vmem:[%s2556_s0 + $0xe8] sm:$0xff] }
  0x1d   :  { %v1760_v4 = vpack.c.bf16 %v242_v57, %v234_v54  ;;  %v244_v5 = vmul.f32 0.25, %v212_v58  ;;  %v103_v6 = vmax.f32 %v71_v60, 0.0  ;;  %v65_v7 = vmul.f32 4.0, %v1675_v56  ;;  %v1916_v58 = vld [vmem:[%s2557_s1 + $0x10] sm:$0xff] }
  0x1e   :  { %1767 = vmatprep.subr.bf16.mxu1 %v1766_v62  ;;  %v127_v8 = vmin.f32 %v95_v63, 4.0  ;;  %v94_v9 = vmax.f32 %v62_v0, 0.0  ;;  %v102_v10 = vmax.f32 %v70_v1, 0.0  ;;  %v73_v11 = vmul.f32 4.0, %v1677_v61  ;;  %v1681_v61 = vld [vmem:[%s2556_s0 + $0xf8] sm:$0xff] }
  0x1f   :  { %1761 = vmatpush1.bf16.msra.mxu0 %v1760_v4  ;;  %v1768_v13 = vpack.c.bf16 %v244_v5, %v236_v59  ;;  %v135_v15 = vmin.f32 %v103_v6, 4.0  ;;  %v97_v16 = vmax.f32 %v65_v7, 0.0  ;;  %v64_v17 = vmul.f32 4.0, %v1674_v2  ;;  %v1678_v2 = vld [vmem:[%s2556_s0 + $0xe0] sm:$0xff] }
  0x20   :  { %v159_v18 = vadd.f32 0.5, %v127_v8  ;;  %v126_v19 = vmin.f32 %v94_v9, 4.0  ;;  %v134_v20 = vmin.f32 %v102_v10, 4.0  ;;  %v105_v21 = vmax.f32 %v73_v11, 0.0 }
  0x21   :  { %1769 = vmatpush1.bf16.msra.mxu1 %v1768_v13  ;;  %v167_v22 = vadd.f32 0.5, %v135_v15  ;;  %v129_v23 = vmin.f32 %v97_v16, 4.0  ;;  %v72_v24 = vmul.f32 4.0, %v1676_v12  ;;  %v96_v25 = vmax.f32 %v64_v17, 0.0  ;;  %v1680_v12 = vld [vmem:[%s2556_s0 + $0xf0] sm:$0xff]  ;;  %v1935_v13 = vld [vmem:[%s2557_s1 + $0x18] sm:$0xff] }
  0x22   :  { %1682 = vmatmul.mubr.msk.f32.vlgmr.msra.gmra.mrb[0].mxu0 %vm250_vm0, %v1880_v14  ;;  %v191_v26 = vfloor.f32 %v159_v18  ;;  %v158_v27 = vadd.f32 0.5, %v126_v19  ;;  %v166_v28 = vadd.f32 0.5, %v134_v20  ;;  %v137_v29 = vmin.f32 %v105_v21, 4.0 }
  0x23   :  { %v199_v30 = vfloor.f32 %v167_v22  ;;  %357 = vmatprep.mubr.f32.mxu0 %v1787_v3  ;;  %v161_v32 = vadd.f32 0.5, %v129_v23  ;;  %v104_v33 = vmax.f32 %v72_v24, 0.0  ;;  %v128_v34 = vmin.f32 %v96_v25, 4.0 }
  0x24   :  { %1694 = vmatmul.mubr.msk.f32.vlgmr.msra.gmra.mrb[0].mxu1 %vm250_vm0, %v1880_v14  ;;  %v223_v36 = vmul.f32 0.25, %v191_v26  ;;  %v190_v37 = vfloor.f32 %v158_v27  ;;  %v198_v38 = vfloor.f32 %v166_v28  ;;  %v169_v39 = vadd.f32 0.5, %v137_v29 }
  0x25   :  { %v231_v40 = vmul.f32 0.25, %v199_v30  ;;  %494 = vmatprep.mubr.f32.mxu1 %v1787_v3  ;;  %v193_v41 = vfloor.f32 %v161_v32  ;;  %v136_v42 = vmin.f32 %v104_v33, 4.0  ;;  %v160_v43 = vadd.f32 0.5, %v128_v34  ;;  %v1947_v32 = vld [vmem:[%s2557_s1 + $0x20] sm:$0xff] }
  0x26   :  { %v222_v45 = vmul.f32 0.25, %v190_v37  ;;  %v230_v46 = vmul.f32 0.25, %v198_v38  ;;  %1683 = vmatmul.mubr.msk.f32.gmra.mrb[2].mxu0 %vm250_vm0, %v1888_v31  ;;  %v201_v47 = vfloor.f32 %v169_v39  ;;  %v79_v48 = vmul.f32 4.0, %v1671_v35 }
  0x27   :  { %v1770_v51 = vpack.c.bf16 %v231_v40, %v223_v36  ;;  %v225_v52 = vmul.f32 0.25, %v193_v41  ;;  %v168_v53 = vadd.f32 0.5, %v136_v42  ;;  %v192_v54 = vfloor.f32 %v160_v43  ;;  %363 = vmatprep.mubr.f32.mxu0 %v1787_v3 }
  0x28   :  { %v1772_v56 = vpack.c.bf16 %v230_v46, %v222_v45  ;;  %1695 = vmatmul.mubr.msk.f32.gmra.mrb[2].mxu1 %vm250_vm0, %v1888_v31  ;;  %v233_v57 = vmul.f32 0.25, %v201_v47  ;;  %v87_v59 = vmul.f32 4.0, %v1673_v44  ;;  %v111_v60 = vmax.f32 %v79_v48, 0.0  ;;  %v1958_v48 = vld [vmem:[%s2557_s1 + $0x28] sm:$0xff] }
  0x29   :  { %1771 = vmatprep.subr.bf16.mxu0 %v1770_v51  ;;  %v200_v62 = vfloor.f32 %v168_v53  ;;  %v224_v63 = vmul.f32 0.25, %v192_v54  ;;  %500 = vmatprep.mubr.f32.mxu1 %v1787_v3  ;;  %v78_v0 = vmul.f32 4.0, %v1670_v49  ;;  %v86_v1 = vmul.f32 4.0, %v1672_v50 }
  0x2a   :  { %1773 = vmatpush1.bf16.msra.mxu0 %v1772_v56  ;;  %v1778_v4 = vpack.c.bf16 %v233_v57, %v225_v52  ;;  %v119_v5 = vmax.f32 %v87_v59, 0.0  ;;  %v143_v6 = vmin.f32 %v111_v60, 4.0  ;;  %v81_v7 = vmul.f32 4.0, %v1679_v55  ;;  %v17_v59 = vld [vmem:[%s2557_s1 + $0x30] sm:$0xff] }
  0x2b   :  { %v232_v8 = vmul.f32 0.25, %v200_v62  ;;  %1684 = vmatmul.mubr.msk.f32.gmra.mrb[4].mxu0 %vm250_vm0, %v1916_v58  ;;  %v110_v9 = vmax.f32 %v78_v0, 0.0  ;;  %v118_v10 = vmax.f32 %v86_v1, 0.0  ;;  %v89_v11 = vmul.f32 4.0, %v1681_v61  ;;  %v18_v62 = vld [vmem:[%s2557_s1 + $0x38] sm:$0xff]  ;;  %v20_v0 = vld [vmem:[%s2557_s1 + $0x48] sm:$0xff] }
  0x2c   :  { %1779 = vmatprep.subr.bf16.mxu1 %v1778_v4  ;;  %1696 = vmatmul.mubr.msk.f32.gmra.mrb[4].mxu1 %vm250_vm0, %v1916_v58  ;;  %v151_v15 = vmin.f32 %v119_v5, 4.0  ;;  %v175_v16 = vadd.f32 0.5, %v143_v6  ;;  %v113_v17 = vmax.f32 %v81_v7, 0.0  ;;  %v80_v18 = vmul.f32 4.0, %v1678_v2  ;;  %v21_v1 = vld [vmem:[%s2557_s1 + $0x50] sm:$0xff]  ;;  %v22_v2 = vld [vmem:[%s2557_s1 + $0x58] sm:$0xff] }
  0x2d   :  { %v1780_v19 = vpack.c.bf16 %v232_v8, %v224_v63  ;;  %369 = vmatprep.mubr.f32.mxu0 %v1787_v3  ;;  %506 = vmatprep.mubr.f32.mxu1 %v1787_v3  ;;  %v142_v20 = vmin.f32 %v110_v9, 4.0  ;;  %v150_v21 = vmin.f32 %v118_v10, 4.0  ;;  %v121_v22 = vmax.f32 %v89_v11, 0.0  ;;  %v19_v63 = vld [vmem:[%s2557_s1 + $0x40] sm:$0xff] }
  0x2e   :  { %v183_v23 = vadd.f32 0.5, %v151_v15  ;;  %v207_v24 = vfloor.f32 %v175_v16  ;;  %v145_v25 = vmin.f32 %v113_v17, 4.0  ;;  %v88_v26 = vmul.f32 4.0, %v1680_v12 }
  0x2f   :  { %1781 = vmatpush1.bf16.msra.mxu1 %v1780_v19  ;;  %1685 = vmatmul.mubr.msk.f32.gmra.mrb[6].mxu0 %vm250_vm0, %v1935_v13  ;;  %v174_v27 = vadd.f32 0.5, %v142_v20  ;;  %v182_v28 = vadd.f32 0.5, %v150_v21  ;;  %v153_v29 = vmin.f32 %v121_v22, 4.0  ;;  %v112_v30 = vmax.f32 %v80_v18, 0.0 }
  0x30   :  { %1697 = vmatmul.mubr.msk.f32.gmra.mrb[6].mxu1 %vm250_vm0, %v1935_v13  ;;  %375 = vmatprep.mubr.f32.mxu0 %v1787_v3  ;;  %v215_v33 = vfloor.f32 %v183_v23  ;;  %v239_v34 = vmul.f32 0.25, %v207_v24  ;;  %v177_v35 = vadd.f32 0.5, %v145_v25  ;;  %v120_v36 = vmax.f32 %v88_v26, 0.0 }
  0x31   :  { %512 = vmatprep.mubr.f32.mxu1 %v1787_v3  ;;  %v206_v37 = vfloor.f32 %v174_v27  ;;  %v214_v38 = vfloor.f32 %v182_v28  ;;  %v185_v39 = vadd.f32 0.5, %v153_v29  ;;  %v144_v40 = vmin.f32 %v112_v30, 4.0 }
  0x32   :  { %v247_v41 = vmul.f32 0.25, %v215_v33  ;;  %v209_v42 = vfloor.f32 %v177_v35  ;;  %v152_v43 = vmin.f32 %v120_v36, 4.0 }
  0x33   :  { %1686 = vmatmul.mubr.msk.f32.gmra.mrb[8].mxu0 %vm250_vm0, %v1947_v32  ;;  %v238_v44 = vmul.f32 0.25, %v206_v37  ;;  %v246_v45 = vmul.f32 0.25, %v214_v38  ;;  %v217_v46 = vfloor.f32 %v185_v39  ;;  %v176_v47 = vadd.f32 0.5, %v144_v40 }
  0x34   :  { %1698 = vmatmul.mubr.msk.f32.gmra.mrb[8].mxu1 %vm250_vm0, %v1947_v32  ;;  %381 = vmatprep.mubr.f32.mxu0 %v1787_v3  ;;  %v1774_v49 = vpack.c.bf16 %v247_v41, %v239_v34  ;;  %v241_v50 = vmul.f32 0.25, %v209_v42  ;;  %v184_v51 = vadd.f32 0.5, %v152_v43 }
  0x35   :  { %518 = vmatprep.mubr.f32.mxu1 %v1787_v3  ;;  %v1776_v52 = vpack.c.bf16 %v246_v45, %v238_v44  ;;  %v249_v53 = vmul.f32 0.25, %v217_v46  ;;  %v208_v54 = vfloor.f32 %v176_v47 }
  0x36   :  { %1775 = vmatprep.subr.bf16.mxu0 %v1774_v49  ;;  %v216_v55 = vfloor.f32 %v184_v51 }
  0x37   :  { %1687 = vmatmul.mubr.msk.f32.gmra.mrb[10].mxu0 %vm250_vm0, %v1958_v48  ;;  %v1782_v56 = vpack.c.bf16 %v249_v53, %v241_v50  ;;  %v240_v57 = vmul.f32 0.25, %v208_v54 }
  0x38   :  { %1699 = vmatmul.mubr.msk.f32.gmra.mrb[10].mxu1 %vm250_vm0, %v1958_v48  ;;  %387 = vmatprep.mubr.f32.mxu0 %v1787_v3  ;;  %v248_v60 = vmul.f32 0.25, %v216_v55 }
  0x39   :  { %524 = vmatprep.mubr.f32.mxu1 %v1787_v3  ;;  %1777 = vmatpush1.bf16.msra.mxu0 %v1776_v52 }
  0x3a   :  { %1783 = vmatprep.subr.bf16.mxu1 %v1782_v56  ;;  %v1784_v61 = vpack.c.bf16 %v248_v60, %v240_v57 }
  0x3b   :  { %1688 = vmatmul.mubr.msk.f32.gmra.mrb[12].mxu0 %vm250_vm0, %v17_v59 }
  0x3c   :  { %1700 = vmatmul.mubr.msk.f32.gmra.mrb[12].mxu1 %vm250_vm0, %v17_v59  ;;  %393 = vmatprep.mubr.f32.mxu0 %v1787_v3 }
  0x3d   :  { %530 = vmatprep.mubr.f32.mxu1 %v1787_v3  ;;  %1785 = vmatpush1.bf16.msra.mxu1 %v1784_v61 }
  0x3f   :  { %1689 = vmatmul.mubr.msk.f32.gmra.mrb[14].mxu0 %vm250_vm0, %v18_v62 }
  0x40   :  { %1701 = vmatmul.mubr.msk.f32.gmra.mrb[14].mxu1 %vm250_vm0, %v18_v62  ;;  %399 = vmatprep.mubr.f32.mxu0 %v1787_v3 }
  0x41   :  { %536 = vmatprep.mubr.f32.mxu1 %v1787_v3 }
  0x43   :  { %1690 = vmatmul.mubr.msk.f32.gmra.mrb[16].mxu0 %vm250_vm0, %v19_v63 }
  0x44   :  { %1702 = vmatmul.mubr.msk.f32.gmra.mrb[16].mxu1 %vm250_vm0, %v19_v63  ;;  %405 = vmatprep.mubr.f32.mxu0 %v1787_v3 }
  0x45   :  { %542 = vmatprep.mubr.f32.mxu1 %v1787_v3 }
  0x47   :  { %1691 = vmatmul.mubr.msk.f32.gmra.mrb[18].mxu0 %vm250_vm0, %v20_v0 }
  0x48   :  { %1703 = vmatmul.mubr.msk.f32.gmra.mrb[18].mxu1 %vm250_vm0, %v20_v0  ;;  %411 = vmatprep.mubr.f32.mxu0 %v1787_v3 }
  0x49   :  { %548 = vmatprep.mubr.f32.mxu1 %v1787_v3 }
  0x4b   :  { %1692 = vmatmul.mubr.msk.f32.gmra.mrb[20].mxu0 %vm250_vm0, %v21_v1 }
  0x4c   :  { %1704 = vmatmul.mubr.msk.f32.gmra.mrb[20].mxu1 %vm250_vm0, %v21_v1  ;;  %417 = vmatprep.mubr.f32.mxu0 %v1787_v3 }
  0x4d   :  { %554 = vmatprep.mubr.f32.mxu1 %v1787_v3 }
  0x4f   :  { %1693 = vmatmul.mubr.msk.f32.gmra.mrb[22].mxu0 %vm250_vm0, %v22_v2 }
  0x50   :  { %1705 = vmatmul.mubr.msk.f32.gmra.mrb[22].mxu1 %vm250_vm0, %v22_v2  ;;  %625 = vmatprep.mubr.f32.mxu0 %v1787_v3 }
  0x51   :  { %762 = vmatprep.mubr.f32.mxu1 %v1787_v3 }
  0x53   :  { %1706 = vmatmul.mubr.msk.f32.vlgmr.msra.gmra.mrb[24].mxu0 %vm250_vm0, %v1880_v14 }
  0x54   :  { %1718 = vmatmul.mubr.msk.f32.vlgmr.msra.gmra.mrb[24].mxu1 %vm250_vm0, %v1880_v14  ;;  %631 = vmatprep.mubr.f32.mxu0 %v1787_v3 }
  0x55   :  { %768 = vmatprep.mubr.f32.mxu1 %v1787_v3 }
  0x57   :  { %1707 = vmatmul.mubr.msk.f32.gmra.mrb[26].mxu0 %vm250_vm0, %v1888_v31 }
  0x58   :  { %1719 = vmatmul.mubr.msk.f32.gmra.mrb[26].mxu1 %vm250_vm0, %v1888_v31  ;;  %637 = vmatprep.mubr.f32.mxu0 %v1787_v3 }
  0x59   :  { %774 = vmatprep.mubr.f32.mxu1 %v1787_v3 }
  0x5b   :  { %1708 = vmatmul.mubr.msk.f32.gmra.mrb[28].mxu0 %vm250_vm0, %v1916_v58 }
  0x5c   :  { %1720 = vmatmul.mubr.msk.f32.gmra.mrb[28].mxu1 %vm250_vm0, %v1916_v58  ;;  %643 = vmatprep.mubr.f32.mxu0 %v1787_v3 }
  0x5d   :  { %780 = vmatprep.mubr.f32.mxu1 %v1787_v3 }
  0x5f   :  { %1709 = vmatmul.mubr.msk.f32.gmra.mrb[30].mxu0 %vm250_vm0, %v1935_v13 }
  0x60   :  { %1721 = vmatmul.mubr.msk.f32.gmra.mrb[30].mxu1 %vm250_vm0, %v1935_v13  ;;  %649 = vmatprep.mubr.f32.mxu0 %v1787_v3 }
  0x61   :  { %786 = vmatprep.mubr.f32.mxu1 %v1787_v3 }
  0x63   :  { %1710 = vmatmul.mubr.msk.f32.gmra.mrb[32].mxu0 %vm250_vm0, %v1947_v32 }
  0x64   :  { %1722 = vmatmul.mubr.msk.f32.gmra.mrb[32].mxu1 %vm250_vm0, %v1947_v32  ;;  %655 = vmatprep.mubr.f32.mxu0 %v1787_v3 }
  0x65   :  { %792 = vmatprep.mubr.f32.mxu1 %v1787_v3 }
  0x67   :  { %1711 = vmatmul.mubr.msk.f32.gmra.mrb[34].mxu0 %vm250_vm0, %v1958_v48 }
  0x68   :  { %1723 = vmatmul.mubr.msk.f32.gmra.mrb[34].mxu1 %vm250_vm0, %v1958_v48  ;;  %661 = vmatprep.mubr.f32.mxu0 %v1787_v3 }
  0x69   :  { %798 = vmatprep.mubr.f32.mxu1 %v1787_v3 }
  0x6b   :  { %1712 = vmatmul.mubr.msk.f32.gmra.mrb[36].mxu0 %vm250_vm0, %v17_v59 }
  0x6c   :  { %1724 = vmatmul.mubr.msk.f32.gmra.mrb[36].mxu1 %vm250_vm0, %v17_v59  ;;  %667 = vmatprep.mubr.f32.mxu0 %v1787_v3 }
  0x6d   :  { %804 = vmatprep.mubr.f32.mxu1 %v1787_v3 }
  0x6f   :  { %1713 = vmatmul.mubr.msk.f32.gmra.mrb[38].mxu0 %vm250_vm0, %v18_v62 }
  0x70   :  { %1725 = vmatmul.mubr.msk.f32.gmra.mrb[38].mxu1 %vm250_vm0, %v18_v62  ;;  %673 = vmatprep.mubr.f32.mxu0 %v1787_v3 }
  0x71   :  { %810 = vmatprep.mubr.f32.mxu1 %v1787_v3 }
  0x73   :  { %1714 = vmatmul.mubr.msk.f32.gmra.mrb[40].mxu0 %vm250_vm0, %v19_v63 }
  0x74   :  { %1726 = vmatmul.mubr.msk.f32.gmra.mrb[40].mxu1 %vm250_vm0, %v19_v63  ;;  %679 = vmatprep.mubr.f32.mxu0 %v1787_v3 }
  0x75   :  { %816 = vmatprep.mubr.f32.mxu1 %v1787_v3 }
  0x77   :  { %1715 = vmatmul.mubr.msk.f32.gmra.mrb[42].mxu0 %vm250_vm0, %v20_v0 }
  0x78   :  { %1727 = vmatmul.mubr.msk.f32.gmra.mrb[42].mxu1 %vm250_vm0, %v20_v0  ;;  %685 = vmatprep.mubr.f32.mxu0 %v1787_v3 }
  0x79   :  { %822 = vmatprep.mubr.f32.mxu1 %v1787_v3 }
  0x7b   :  { %1716 = vmatmul.mubr.msk.f32.gmra.mrb[44].mxu0 %vm250_vm0, %v21_v1 }
  0x7c   :  { %1728 = vmatmul.mubr.msk.f32.gmra.mrb[44].mxu1 %vm250_vm0, %v21_v1  ;;  %691 = vmatprep.mubr.f32.mxu0 %v1787_v3 }
  0x7d   :  { %828 = vmatprep.mubr.f32.mxu1 %v1787_v3 }
  0x7f   :  { %1717 = vmatmul.mubr.msk.f32.gmra.mrb[46].mxu0 %vm250_vm0, %v22_v2 }
  0x80   :  { %1729 = vmatmul.mubr.msk.f32.gmra.mrb[46].mxu1 %vm250_vm0, %v22_v2 }
  0xf5   :  { %v2067_v14 = vpop.f32.mrb[0].mxu0 }
  0xf6   :  { %v2069_v31 = vpop.f32.mrb[1].mxu0 }
  0xf7   :  { %v2071_v58 = vpop.f32.mrb[0].mxu1 }
  0xf8   :  { %v2073_v4 = vpop.f32.mrb[1].mxu1 }
  0xf9   :  { %2559 = vst [vmem:[#allocation2_spill] sm:$0xff] %v2073_v4  ;;  %v2075_v5 = vpop.f32.mrb[2].mxu0 }
  0xfa   :  { %2560 = vst [vmem:[#allocation3_spill] sm:$0xff] %v2075_v5  ;;  %v2077_v6 = vpop.f32.mrb[3].mxu0 }
  0xfb   :  { %2561 = vst [vmem:[#allocation4_spill] sm:$0xff] %v2077_v6  ;;  %v2079_v7 = vpop.f32.mrb[2].mxu1 }
  0xfc   :  { %2562 = vst [vmem:[#allocation5_spill] sm:$0xff] %v2079_v7  ;;  %v2081_v8 = vpop.f32.mrb[3].mxu1 }
  0xfd   :  { %2563 = vst [vmem:[#allocation6_spill] sm:$0xff] %v2081_v8 }
  0xfe   :  { %v2083_v3 = vpop.f32.mrb[4].mxu0 }
  0xff   :  { %2564 = vst [vmem:[#allocation7_spill] sm:$0xff] %v2083_v3  ;;  %v2085_v9 = vpop.f32.mrb[5].mxu0  ;;  %v2087_v10 = vpop.f32.mrb[4].mxu1 }
 0x100   :  { %2565 = vst [vmem:[#allocation8_spill] sm:$0xff] %v2085_v9  ;;  %2566 = vst [vmem:[#allocation9_spill] sm:$0xff] %v2087_v10  ;;  %v2089_v11 = vpop.f32.mrb[5].mxu1 }
 0x101   :  { %2567 = vst [vmem:[#allocation10_spill] sm:$0xff] %v2089_v11 }
 0x102   :  { %v2091_v12 = vpop.f32.mrb[6].mxu0 }
 0x103   :  { %2568 = vst [vmem:[#allocation11_spill] sm:$0xff] %v2091_v12  ;;  %v2093_v13 = vpop.f32.mrb[7].mxu0  ;;  %v2095_v15 = vpop.f32.mrb[6].mxu1 }
 0x104   :  { %2569 = vst [vmem:[#allocation12_spill] sm:$0xff] %v2093_v13  ;;  %2570 = vst [vmem:[#allocation13_spill] sm:$0xff] %v2095_v15  ;;  %v2097_v16 = vpop.f32.mrb[7].mxu1 }
 0x105   :  { %2571 = vst [vmem:[#allocation14_spill] sm:$0xff] %v2097_v16 }
 0x106   :  { %v377_v17 = vpop.f32.mrb[8].mxu0 }
 0x107   :  { %v379_v18 = vpop.f32.mrb[9].mxu0  ;;  %v514_v19 = vpop.f32.mrb[8].mxu1  ;;  %v1027_v38 = vmul.f32 4.0, %v377_v17 }
 0x108   :  { %v516_v20 = vpop.f32.mrb[9].mxu1  ;;  %v1028_v39 = vmul.f32 4.0, %v379_v18  ;;  %v1029_v47 = vmul.f32 4.0, %v514_v19 }
 0x109   :  { %v1059_v45 = vmax.f32 %v1027_v38, 0.0  ;;  %v1030_v49 = vmul.f32 4.0, %v516_v20 }
 0x10a   :  { %v383_v21 = vpop.f32.mrb[10].mxu0  ;;  %v1060_v46 = vmax.f32 %v1028_v39, 0.0  ;;  %v1061_v59 = vmax.f32 %v1029_v47, 0.0 }
 0x10b   :  { %v385_v22 = vpop.f32.mrb[11].mxu0  ;;  %v520_v23 = vpop.f32.mrb[10].mxu1  ;;  %v1035_v41 = vmul.f32 4.0, %v383_v21  ;;  %v1091_v56 = vmin.f32 %v1059_v45, 4.0  ;;  %v1062_v61 = vmax.f32 %v1030_v49, 0.0 }
 0x10c   :  { %v2099_v24 = vpop.f32.mrb[11].mxu1  ;;  %v1036_v48 = vmul.f32 4.0, %v385_v22  ;;  %v1092_v57 = vmin.f32 %v1060_v46, 4.0  ;;  %v1037_v17 = vmul.f32 4.0, %v520_v23  ;;  %v1093_v21 = vmin.f32 %v1061_v59, 4.0 }
 0x10d   :  { %v1067_v52 = vmax.f32 %v1035_v41, 0.0  ;;  %v1123_v19 = vadd.f32 0.5, %v1091_v56 }
 0x10e   :  { %v389_v25 = vpop.f32.mrb[12].mxu0  ;;  %v1068_v60 = vmax.f32 %v1036_v48, 0.0  ;;  %v1124_v20 = vadd.f32 0.5, %v1092_v57  ;;  %v1069_v47 = vmax.f32 %v1037_v17, 0.0  ;;  %v1125_v57 = vadd.f32 0.5, %v1093_v21 }
 0x10f   :  { %v391_v26 = vpop.f32.mrb[13].mxu0  ;;  %v2101_v27 = vpop.f32.mrb[12].mxu1  ;;  %v1043_v50 = vmul.f32 4.0, %v389_v25  ;;  %v1099_v0 = vmin.f32 %v1067_v52, 4.0  ;;  %v1094_v25 = vmin.f32 %v1062_v61, 4.0  ;;  %v1155_v23 = vfloor.f32 %v1123_v19 }
 0x110   :  { %v2103_v28 = vpop.f32.mrb[13].mxu1  ;;  %v1100_v22 = vmin.f32 %v1068_v60, 4.0  ;;  %v1044_v48 = vmul.f32 4.0, %v391_v26  ;;  %v1156_v52 = vfloor.f32 %v1124_v20  ;;  %v1101_v26 = vmin.f32 %v1069_v47, 4.0 }
 0x111   :  { %v1075_v62 = vmax.f32 %v1043_v50, 0.0  ;;  %v1131_v41 = vadd.f32 0.5, %v1099_v0  ;;  %v1126_v60 = vadd.f32 0.5, %v1094_v25  ;;  %v1038_v0 = vmul.f32 4.0, %v2099_v24 }
 0x112   :  { %v2105_v29 = vpop.f32.mrb[14].mxu0  ;;  %v1132_v59 = vadd.f32 0.5, %v1100_v22  ;;  %v2156_v20 = vmul.f32 0.25, %v1156_v52  ;;  %v1157_v25 = vfloor.f32 %v1125_v57  ;;  %v1133_v52 = vadd.f32 0.5, %v1101_v26 }
 0x113   :  { %v2107_v30 = vpop.f32.mrb[15].mxu0  ;;  %v2109_v32 = vpop.f32.mrb[14].mxu1  ;;  %v1107_v38 = vmin.f32 %v1075_v62, 4.0  ;;  %v1070_v47 = vmax.f32 %v1038_v0, 0.0 }
 0x114   :  { %v2111_v33 = vpop.f32.mrb[15].mxu1 }
 0x115   :  { %v1139_v61 = vadd.f32 0.5, %v1107_v38  ;;  %v1164_v38 = vfloor.f32 %v1132_v59 }
 0x116   :  { %v401_v34 = vpop.f32.mrb[16].mxu0 }
 0x117   :  { %v538_v35 = vpop.f32.mrb[16].mxu1  ;;  %v403_v36 = vpop.f32.mrb[17].mxu0  ;;  %v1219_v49 = vmul.f32 4.0, %v401_v34  ;;  %v1076_v34 = vmax.f32 %v1044_v48, 0.0  ;;  %v1171_v24 = vfloor.f32 %v1139_v61  ;;  %v1051_v48 = vmul.f32 4.0, %v2105_v29 }
 0x118   :  { %v2113_v37 = vpop.f32.mrb[17].mxu1  ;;  %v1220_v56 = vmul.f32 4.0, %v403_v36  ;;  %v2154_v36 = vmul.f32 0.25, %v1155_v23  ;;  %v2174_v29 = vmul.f32 0.25, %v1164_v38 }
 0x119   :  { %v1251_v17 = vmax.f32 %v1219_v49, 0.0 }
 0x11a   :  { %v2115_v40 = vpop.f32.mrb[18].mxu0  ;;  %v1252_v21 = vmax.f32 %v1220_v56, 0.0  ;;  %v1108_v56 = vmin.f32 %v1076_v34, 4.0  ;;  %v1102_v34 = vmin.f32 %v1070_v47, 4.0  ;;  %v2192_v47 = vmul.f32 4.0, %v2103_v28 }
 0x11b   :  { %v544_v42 = vpop.f32.mrb[18].mxu1  ;;  %v2117_v43 = vpop.f32.mrb[19].mxu0  ;;  %v2206_v28 = vmul.f32 4.0, %v2109_v32 }
 0x11c   :  { %v2119_v44 = vpop.f32.mrb[19].mxu1  ;;  %v1229_v22 = vmul.f32 4.0, %v544_v42  ;;  %v1283_v42 = vmin.f32 %v1251_v17, 4.0  ;;  %v1284_v61 = vmin.f32 %v1252_v21, 4.0  ;;  %v1052_v17 = vmul.f32 4.0, %v2107_v30 }
 0x11d   :  { %v1227_v30 = vmul.f32 4.0, %v2115_v40 }
 0x11e   :  { %v2121_v51 = vpop.f32.mrb[20].mxu0  ;;  %v1261_v0 = vmax.f32 %v1229_v22, 0.0  ;;  %v2187_v22 = vadd.f32 0.5, %v1108_v56  ;;  %v2199_v56 = vadd.f32 0.5, %v1102_v34 }
 0x11f   :  { %v2123_v53 = vpop.f32.mrb[20].mxu1  ;;  %v2125_v54 = vpop.f32.mrb[21].mxu0 }
 0x120   :  { %v2127_v55 = vpop.f32.mrb[21].mxu1  ;;  %v1166_v32 = vfloor.f32 %v2199_v56 }
 0x122   :  { %v2129_v63 = vpop.f32.mrb[22].mxu0 }
 0x123   :  { %v2131_v1 = vpop.f32.mrb[22].mxu1  ;;  %v2133_v2 = vpop.f32.mrb[23].mxu0 }
 0x124   :  { %v2135_v18 = vpop.f32.mrb[23].mxu1 }
 0x126   :  { %v2137_v39 = vpop.f32.mrb[24].mxu0 }
 0x127   :  { %2572 = vst [vmem:[#allocation15_spill] sm:$0xff] %v2137_v39  ;;  %v2139_v45 = vpop.f32.mrb[25].mxu0  ;;  %v2141_v46 = vpop.f32.mrb[24].mxu1  ;;  %v1163_v39 = vfloor.f32 %v1131_v41  ;;  %v1158_v41 = vfloor.f32 %v1126_v60  ;;  %v1045_v60 = vmul.f32 4.0, %v2101_v27 }
 0x128   :  { %2573 = vst [vmem:[#allocation16_spill] sm:$0xff] %v2139_v45  ;;  %2574 = vst [vmem:[#allocation17_spill] sm:$0xff] %v2141_v46  ;;  %v2143_v50 = vpop.f32.mrb[25].mxu1 }
 0x129   :  { %2575 = vst [vmem:[#allocation18_spill] sm:$0xff] %v2143_v50  ;;  %v1221_v50 = vmul.f32 4.0, %v538_v35  ;;  %v1230_v35 = vmul.f32 4.0, %v2119_v44  ;;  %v2176_v44 = vmul.f32 0.25, %v1158_v41 }
 0x12a   :  { %v2145_v62 = vpop.f32.mrb[26].mxu0 }
 0x12b   :  { %2576 = vst [vmem:[#allocation19_spill] sm:$0xff] %v2145_v62  ;;  %v2148_v45 = vpop.f32.mrb[27].mxu0  ;;  %v2150_v46 = vpop.f32.mrb[26].mxu1  ;;  %v1253_v57 = vmax.f32 %v1221_v50, 0.0  ;;  %v1083_v50 = vmax.f32 %v1051_v48, 0.0  ;;  %v1228_v48 = vmul.f32 4.0, %v2117_v43 }
 0x12c   :  { %2577 = vst [vmem:[#allocation20_spill] sm:$0xff] %v2148_v45  ;;  %2578 = vst [vmem:[#allocation21_spill] sm:$0xff] %v2150_v46  ;;  %v2152_v19 = vpop.f32.mrb[27].mxu1  ;;  %v2160_v45 = vmul.f32 0.25, %v1163_v39  ;;  %v1222_v39 = vmul.f32 4.0, %v2113_v37  ;;  %v1165_v37 = vfloor.f32 %v1133_v52  ;;  %v1236_v43 = vmul.f32 4.0, %v2125_v54 }
 0x12d   :  { %2579 = vst [vmem:[#allocation22_spill] sm:$0xff] %v2152_v19  ;;  %v2172_v19 = vmul.f32 0.25, %v1157_v25  ;;  %v1315_v25 = vadd.f32 0.5, %v1283_v42  ;;  %v1285_v38 = vmin.f32 %v1253_v57, 4.0  ;;  %v1115_v42 = vmin.f32 %v1083_v50, 4.0 }
 0x12e   :  { %v2158_v62 = vpop.f32.mrb[28].mxu0  ;;  %v1254_v46 = vmax.f32 %v1222_v39, 0.0  ;;  %v1084_v57 = vmax.f32 %v1052_v17, 0.0  ;;  %v1259_v17 = vmax.f32 %v1227_v30, 0.0  ;;  %v1268_v30 = vmax.f32 %v1236_v43, 0.0 }
 0x12f   :  { %2580 = vst [vmem:[#allocation23_spill] sm:$0xff] %v2158_v62  ;;  %v2164_v49 = vpop.f32.mrb[29].mxu0  ;;  %v2166_v23 = vpop.f32.mrb[28].mxu1  ;;  %v1347_v39 = vfloor.f32 %v1315_v25  ;;  %v1317_v40 = vadd.f32 0.5, %v1285_v38 }
 0x130   :  { %2581 = vst [vmem:[#allocation24_spill] sm:$0xff] %v2164_v49  ;;  %2582 = vst [vmem:[#allocation25_spill] sm:$0xff] %v2166_v23  ;;  %v2168_v59 = vpop.f32.mrb[29].mxu1  ;;  %v2178_v49 = vmul.f32 0.25, %v1171_v24  ;;  %v1077_v24 = vmax.f32 %v1045_v60, 0.0  ;;  %v1316_v23 = vadd.f32 0.5, %v1284_v61 }
 0x131   :  { %2583 = vst [vmem:[#allocation26_spill] sm:$0xff] %v2168_v59  ;;  %v1262_v59 = vmax.f32 %v1230_v35, 0.0  ;;  %v1235_v35 = vmul.f32 4.0, %v2121_v51  ;;  %v2211_v51 = vmul.f32 0.25, %v1165_v37  ;;  %v1291_v56 = vmin.f32 %v1259_v17, 4.0 }
 0x132   :  { %v2180_v26 = vpop.f32.mrb[30].mxu0  ;;  %v1348_v34 = vfloor.f32 %v1316_v23  ;;  %v2217_v25 = vmin.f32 %v1077_v24, 4.0  ;;  %v1379_v23 = vmul.f32 0.25, %v1347_v39  ;;  %v1237_v24 = vmul.f32 4.0, %v2123_v53 }
 0x133   :  { %2584 = vst [vmem:[#allocation27_spill] sm:$0xff] %v2180_v26  ;;  %v2183_v27 = vpop.f32.mrb[31].mxu0  ;;  %v2185_v21 = vpop.f32.mrb[30].mxu1  ;;  %v1293_v26 = vmin.f32 %v1261_v0, 4.0  ;;  %v1267_v62 = vmax.f32 %v1235_v35, 0.0  ;;  %v2232_v12 = vmin.f32 %v1084_v57, 4.0 }
 0x134   :  { %2585 = vst [vmem:[#allocation28_spill] sm:$0xff] %v2183_v27  ;;  %2586 = vst [vmem:[#allocation29_spill] sm:$0xff] %v2185_v21  ;;  %v2189_v41 = vpop.f32.mrb[31].mxu1  ;;  %v1286_v21 = vmin.f32 %v1254_v46, 4.0  ;;  %v1260_v27 = vmax.f32 %v1228_v48, 0.0  ;;  %v2224_v46 = vadd.f32 0.5, %v1115_v42 }
 0x135   :  { %2587 = vst [vmem:[#allocation30_spill] sm:$0xff] %v2189_v41  ;;  %v1294_v41 = vmin.f32 %v1262_v59, 4.0  ;;  %v1325_v50 = vadd.f32 0.5, %v1293_v26  ;;  %v1349_v26 = vfloor.f32 %v1317_v40  ;;  %v1380_v35 = vmul.f32 0.25, %v1348_v34 }
 0x136   :  { %v2197_v52 = vpop.f32.mrb[32].mxu0  ;;  %v1318_v59 = vadd.f32 0.5, %v1286_v21  ;;  %v1292_v13 = vmin.f32 %v1260_v27, 4.0  ;;  %v1299_v54 = vmin.f32 %v1267_v62, 4.0  ;;  %v1243_v39 = vmul.f32 4.0, %v2129_v63 }
 0x137   :  { %v2201_v60 = vpop.f32.mrb[33].mxu0  ;;  %v2203_v61 = vpop.f32.mrb[32].mxu1  ;;  %v1326_v38 = vadd.f32 0.5, %v1294_v41  ;;  %v1357_v11 = vfloor.f32 %v1325_v50  ;;  %v1238_v41 = vmul.f32 4.0, %v2127_v55  ;;  %v1244_v40 = vmul.f32 4.0, %v2133_v2 }
 0x138   :  { %v2209_v0 = vpop.f32.mrb[33].mxu1  ;;  %v1381_v34 = vmul.f32 0.25, %v1349_v26  ;;  %v1300_v27 = vmin.f32 %v1268_v30, 4.0  ;;  %v1411_v62 = vmul.f32 %v1379_v23, %v2154_v36  ;;  %v1350_v50 = vfloor.f32 %v1318_v59 }
 0x139   :  { %v1358_v42 = vfloor.f32 %v1326_v38  ;;  %v1389_v57 = vmul.f32 0.25, %v1357_v11  ;;  %v1269_v17 = vmax.f32 %v1237_v24, 0.0  ;;  %v1412_v38 = vmul.f32 %v1380_v35, %v2156_v20 }
 0x13a   :  { %v2214_v16 = vpop.f32.mrb[34].mxu0  ;;  %v1323_v63 = vadd.f32 0.5, %v1291_v56  ;;  %v1324_v9 = vadd.f32 0.5, %v1292_v13  ;;  %v1331_v2 = vadd.f32 0.5, %v1299_v54  ;;  %v1270_v3 = vmax.f32 %v1238_v41, 0.0 }
 0x13b   :  { %v2220_v15 = vpop.f32.mrb[35].mxu0  ;;  %v2222_v37 = vpop.f32.mrb[34].mxu1  ;;  %v1390_v7 = vmul.f32 0.25, %v1358_v42  ;;  %v1275_v6 = vmax.f32 %v1243_v39, 0.0  ;;  %v1276_v53 = vmax.f32 %v1244_v40, 0.0  ;;  %v1443_v26 = vadd.f32 %v1412_v38, %v1411_v62 }
 0x13c   :  { %v2226_v48 = vpop.f32.mrb[35].mxu1  ;;  %v1198_v23 = vmul.f32 0.25, %v1166_v32  ;;  %v1054_v11 = vmul.f32 4.0, %v2111_v33  ;;  %v1332_v59 = vadd.f32 0.5, %v1300_v27  ;;  %v1245_v20 = vmul.f32 4.0, %v2131_v1 }
 0x13d   :  { %v1382_v13 = vmul.f32 0.25, %v1350_v50  ;;  %v1301_v54 = vmin.f32 %v1269_v17, 4.0  ;;  %v1246_v24 = vmul.f32 4.0, %v2135_v18  ;;  %1444 = vadd.xlane.f32.xlu0 %v1443_v26  ;;  %v1421_v56 = vmul.f32 %v1389_v57, %v2211_v51 }
 0x13e   :  { %v2230_v10 = vpop.f32.mrb[36].mxu0  ;;  %v1355_v41 = vfloor.f32 %v1323_v63  ;;  %v1356_v42 = vfloor.f32 %v1324_v9  ;;  %v1363_v39 = vfloor.f32 %v1331_v2  ;;  %v1302_v40 = vmin.f32 %v1270_v3, 4.0 }
 0x13f   :  { %v2236_v43 = vpop.f32.mrb[37].mxu0  ;;  %v2238_v21 = vpop.f32.mrb[36].mxu1  ;;  %v1307_v32 = vmin.f32 %v1275_v6, 4.0  ;;  %v1308_v33 = vmin.f32 %v1276_v53, 4.0  ;;  %v1422_v27 = vmul.f32 %v1390_v7, %v1198_v23  ;;  %v1413_v1 = vmul.f32 %v1381_v34, %v2172_v19 }
 0x140   :  { %v2242_v55 = vpop.f32.mrb[37].mxu1  ;;  %v1141_v18 = vadd.f32 0.5, %v2217_v25  ;;  %v2588_v17 = vmax.f32 %v2192_v47, 0.0  ;;  %v1364_v57 = vfloor.f32 %v1332_v59  ;;  %v1277_v9 = vmax.f32 %v1245_v20, 0.0 }
 0x141   :  { %v1333_v3 = vadd.f32 0.5, %v1301_v54  ;;  %v1278_v2 = vmax.f32 %v1246_v24, 0.0  ;;  %v1498_v6 = vadd.f32 %v1422_v27, %v1421_v56  ;;  %v1414_v7 = vmul.f32 %v1382_v13, %v2176_v44 }
 0x142   :  { %v2245_v8 = vpop.f32.mrb[38].mxu0  ;;  %v1110_v51 = vmin.f32 %v2588_v17, 4.0  ;;  %v1086_v53 = vmax.f32 %v1054_v11, 0.0  ;;  %v1387_v19 = vmul.f32 0.25, %v1355_v41  ;;  %v1388_v34 = vmul.f32 0.25, %v1356_v42 }
 0x143   :  { %v2247_v30 = vpop.f32.mrb[39].mxu0  ;;  %v2249_v36 = vpop.f32.mrb[38].mxu1  ;;  %v1334_v26 = vadd.f32 0.5, %v1302_v40  ;;  %v1395_v5 = vmul.f32 0.25, %v1363_v39  ;;  %v1339_v25 = vadd.f32 0.5, %v1307_v32  ;;  %v1340_v4 = vadd.f32 0.5, %v1308_v33  ;;  %1499 = vadd.xlane.f32.xlu1 %v1498_v6 }
 0x144   :  { %v2253_v35 = vpop.f32.mrb[39].mxu1  ;;  %v1495_v47 = vadd.f32 %v1414_v7, %v1413_v1  ;;  %v2589_v54 = vfloor.f32 %v2187_v22  ;;  %v1142_v56 = vadd.f32 0.5, %v1110_v51  ;;  %v1396_v44 = vmul.f32 0.25, %v1364_v57 }
 0x145   :  { %v1309_v11 = vmin.f32 %v1277_v9, 4.0  ;;  %v1148_v41 = vadd.f32 0.5, %v2232_v12  ;;  %v2590_v42 = vmax.f32 %v2206_v28, 0.0  ;;  %v1365_v40 = vfloor.f32 %v1333_v3 }
 0x146   :  { %v2257_v62 = vpop.f32.mrb[40].mxu0  ;;  %v1204_v24 = vmul.f32 0.25, %v2589_v54  ;;  %v1310_v32 = vmin.f32 %v1278_v2, 4.0  ;;  %1496 = vadd.xlane.f32.xlu0 %v1495_v47  ;;  %v1173_v33 = vfloor.f32 %v1141_v18  ;;  %v1366_v27 = vfloor.f32 %v1334_v26 }
 0x147   :  { %v2260_v38 = vpop.f32.mrb[40].mxu1  ;;  %v2262_v50 = vpop.f32.mrb[41].mxu0  ;;  %v1117_v39 = vmin.f32 %v2590_v42, 4.0  ;;  %v1419_v1 = vmul.f32 %v1387_v19, %v2160_v45  ;;  %v1420_v22 = vmul.f32 %v1388_v34, %v2174_v29  ;;  %v1118_v51 = vmin.f32 %v1086_v53, 4.0 }
 0x148   :  { %v2267_v63 = vpop.f32.mrb[41].mxu1  ;;  %v1371_v57 = vfloor.f32 %v1339_v25  ;;  %v1372_v9 = vfloor.f32 %v1340_v4  ;;  %v1427_v6 = vmul.f32 %v1395_v5, %v2178_v49  ;;  %v1174_v3 = vfloor.f32 %v1142_v56 }
 0x149   :  { %v1341_v2 = vadd.f32 0.5, %v1309_v11  ;;  %v1446_v7 = vadd.f32 %v1420_v22, %v1419_v1  ;;  %v1428_v18 = vmul.f32 %v1396_v44, %v1204_v24  ;;  %v1179_v45 = vfloor.f32 %v2224_v46 }
 0x14a   :  { %v2270_v23 = vpop.f32.mrb[42].mxu0  ;;  %v1180_v29 = vfloor.f32 %v1148_v41  ;;  %v1397_v19 = vmul.f32 0.25, %v1365_v40  ;;  %v1342_v34 = vadd.f32 0.5, %v1310_v32  ;;  %v1149_v53 = vadd.f32 0.5, %v1117_v39 }
 0x14b   :  { %v2272_v59 = vpop.f32.mrb[42].mxu1  ;;  %v2274_v20 = vpop.f32.mrb[43].mxu0  ;;  %v1398_v25 = vmul.f32 0.25, %v1366_v27  ;;  %1447 = vadd.xlane.f32.xlu0 %v1446_v7  ;;  %v1449_v4 = vadd.f32 %v1428_v18, %v1427_v6  ;;  %v1205_v49 = vmul.f32 0.25, %v1173_v33  ;;  %v1150_v47 = vadd.f32 0.5, %v1118_v51 }
 0x14c   :  { %v2278_v13 = vpop.f32.mrb[43].mxu1  ;;  %v1403_v54 = vmul.f32 0.25, %v1371_v57  ;;  %v1404_v56 = vmul.f32 0.25, %v1372_v9  ;;  %v1206_v44 = vmul.f32 0.25, %v1174_v3  ;;  %v1373_v42 = vfloor.f32 %v1341_v2 }
 0x14d   :  { %1450 = vadd.xlane.f32.xlu1 %v1449_v4  ;;  %v1211_v41 = vmul.f32 0.25, %v1179_v45  ;;  %v1212_v39 = vmul.f32 0.25, %v1180_v29  ;;  %v1374_v40 = vfloor.f32 %v1342_v34  ;;  %v1429_v32 = vmul.f32 %v1397_v19, %v1205_v49 }
 0x14e   :  { %v2285_v17 = vpop.f32.mrb[44].mxu0  ;;  %v1181_v27 = vfloor.f32 %v1149_v53  ;;  %v1430_v1 = vmul.f32 %v1398_v25, %v1206_v44  ;;  %v1182_v22 = vfloor.f32 %v1150_v47  ;;  %v1405_v57 = vmul.f32 0.25, %v1373_v42 }
 0x14f   :  { %v2288_v12 = vpop.f32.mrb[44].mxu1  ;;  %v2290_v28 = vpop.f32.mrb[45].mxu0  ;;  %v1435_v33 = vmul.f32 %v1403_v54, %v1211_v41  ;;  %v1436_v51 = vmul.f32 %v1404_v56, %v1212_v39  ;;  %v1406_v6 = vmul.f32 0.25, %v1374_v40  ;;  %v1031_v18 = vmul.f32 4.0, %v2197_v52 }
 0x150   :  { %v2292_v26 = vpop.f32.mrb[45].mxu1  ;;  %v1501_v9 = vadd.f32 %v1430_v1, %v1429_v32  ;;  %v1213_v3 = vmul.f32 0.25, %v1181_v27  ;;  %v1032_v2 = vmul.f32 4.0, %v2201_v60  ;;  %v1214_v4 = vmul.f32 0.25, %v1182_v22 }
 0x151   :  { %v1452_v7 = vadd.f32 %v1436_v51, %v1435_v33  ;;  %v1063_v45 = vmax.f32 %v1031_v18, 0.0  ;;  %v1039_v49 = vmul.f32 4.0, %v2214_v16  ;;  %v1033_v47 = vmul.f32 4.0, %v2203_v61 }
 0x152   :  { %v2295_v5 = vpop.f32.mrb[46].mxu0  ;;  %1502 = vadd.xlane.f32.xlu0 %v1501_v9  ;;  %v1064_v29 = vmax.f32 %v1032_v2, 0.0  ;;  %v1437_v19 = vmul.f32 %v1405_v57, %v1213_v3  ;;  %v1438_v53 = vmul.f32 %v1406_v6, %v1214_v4  ;;  %v1040_v41 = vmul.f32 4.0, %v2220_v15 }
 0x153   :  { %v2297_v11 = vpop.f32.mrb[46].mxu1  ;;  %v2299_v24 = vpop.f32.mrb[47].mxu0  ;;  %1453 = vadd.xlane.f32.xlu1 %v1452_v7  ;;  %v1095_v34 = vmin.f32 %v1063_v45, 4.0  ;;  %v1071_v52 = vmax.f32 %v1039_v49, 0.0  ;;  %v1065_v42 = vmax.f32 %v1033_v47, 0.0  ;;  %v1034_v39 = vmul.f32 4.0, %v2209_v0 }
 0x154   :  { %v2301_v46 = vpop.f32.mrb[47].mxu1  ;;  %v1096_v25 = vmin.f32 %v1064_v29, 4.0  ;;  %v1504_v56 = vadd.f32 %v1438_v53, %v1437_v19  ;;  %v1072_v27 = vmax.f32 %v1040_v41, 0.0  ;;  %v1047_v9 = vmul.f32 4.0, %v2230_v10 }
 0x155   :  { %v1127_v54 = vadd.f32 0.5, %v1095_v34  ;;  %v1103_v40 = vmin.f32 %v1071_v52, 4.0  ;;  %v1097_v32 = vmin.f32 %v1065_v42, 4.0  ;;  %v1066_v1 = vmax.f32 %v1034_v39, 0.0 }
 0x156   :  { %v1128_v44 = vadd.f32 0.5, %v1096_v25  ;;  %v1104_v51 = vmin.f32 %v1072_v27, 4.0  ;;  %v1041_v6 = vmul.f32 4.0, %v2222_v37  ;;  %v1048_v0 = vmul.f32 4.0, %v2236_v43 }
 0x157   :  { %v1159_v60 = vfloor.f32 %v1127_v54  ;;  %1505 = vadd.xlane.f32.xlu1 %v1504_v56  ;;  %v1135_v33 = vadd.f32 0.5, %v1103_v40  ;;  %v1129_v16 = vadd.f32 0.5, %v1097_v32  ;;  %v1098_v57 = vmin.f32 %v1066_v1, 4.0 }
 0x158   :  { %v1160_v22 = vfloor.f32 %v1128_v44  ;;  %v1136_v18 = vadd.f32 0.5, %v1104_v51  ;;  %v1079_v2 = vmax.f32 %v1047_v9, 0.0  ;;  %v1073_v4 = vmax.f32 %v1041_v6, 0.0 }
 0x159   :  { %v2309_v61 = vmul.f32 0.25, %v1159_v60  ;;  %v1167_v15 = vfloor.f32 %v1135_v33  ;;  %v1161_v7 = vfloor.f32 %v1129_v16  ;;  %v1130_v3 = vadd.f32 0.5, %v1098_v57 }
 0x15a   :  { %v1042_v45 = vmul.f32 4.0, %v2226_v48  ;;  %v2315_v29 = vmul.f32 0.25, %v1160_v22  ;;  %v1168_v34 = vfloor.f32 %v1136_v18  ;;  %v1080_v53 = vmax.f32 %v1048_v0, 0.0 }
 0x15b   :  { %v2317_v19 = vmul.f32 0.25, %v1167_v15  ;;  %v2319_v25 = vmul.f32 0.25, %v1161_v7  ;;  %v1111_v10 = vmin.f32 %v1079_v2, 4.0  ;;  %v1105_v37 = vmin.f32 %v1073_v4, 4.0 }
 0x15c   :  { %v1074_v49 = vmax.f32 %v1042_v45, 0.0  ;;  %v1162_v47 = vfloor.f32 %v1130_v3  ;;  %v1112_v54 = vmin.f32 %v1080_v53, 4.0  ;;  %v1055_v43 = vmul.f32 4.0, %v2245_v8 }
 0x15d   :  { %v1049_v56 = vmul.f32 4.0, %v2238_v21  ;;  %v2323_v44 = vmul.f32 0.25, %v1168_v34  ;;  %v1143_v48 = vadd.f32 0.5, %v1111_v10  ;;  %v1137_v52 = vadd.f32 0.5, %v1105_v37 }
 0x15e   :  { %v1106_v42 = vmin.f32 %v1074_v49, 4.0  ;;  %v1144_v41 = vadd.f32 0.5, %v1112_v54  ;;  %v1087_v60 = vmax.f32 %v1055_v43, 0.0  ;;  %v1056_v40 = vmul.f32 4.0, %v2247_v30 }
 0x15f   :  { %v1081_v39 = vmax.f32 %v1049_v56, 0.0  ;;  %v1175_v32 = vfloor.f32 %v1143_v48  ;;  %v1169_v27 = vfloor.f32 %v1137_v52  ;;  %v1050_v22 = vmul.f32 4.0, %v2242_v55 }
 0x160   :  { %v1138_v1 = vadd.f32 0.5, %v1106_v42  ;;  %v1176_v33 = vfloor.f32 %v1144_v41  ;;  %v1119_v16 = vmin.f32 %v1087_v60, 4.0  ;;  %v1088_v51 = vmax.f32 %v1056_v40, 0.0 }
 0x161   :  { %v1113_v8 = vmin.f32 %v1081_v39, 4.0  ;;  %v2327_v21 = vmul.f32 0.25, %v1162_v47  ;;  %v2329_v57 = vmul.f32 0.25, %v1175_v32  ;;  %v2331_v9 = vmul.f32 0.25, %v1169_v27 }
 0x162   :  { %v1082_v6 = vmax.f32 %v1050_v22, 0.0  ;;  %v1170_v15 = vfloor.f32 %v1138_v1  ;;  %v1151_v7 = vadd.f32 0.5, %v1119_v16  ;;  %v1120_v30 = vmin.f32 %v1088_v51, 4.0 }
 0x163   :  { %v1145_v18 = vadd.f32 0.5, %v1113_v8  ;;  %v2333_v0 = vmul.f32 0.25, %v1176_v33  ;;  %v1057_v55 = vmul.f32 4.0, %v2249_v36  ;;  %v1058_v2 = vmul.f32 4.0, %v2253_v35 }
 0x164   :  { %v1114_v3 = vmin.f32 %v1082_v6, 4.0  ;;  %v1183_v4 = vfloor.f32 %v1151_v7  ;;  %v1152_v34 = vadd.f32 0.5, %v1120_v30  ;;  %v1223_v53 = vmul.f32 4.0, %v2257_v62 }
 0x165   :  { %v1177_v45 = vfloor.f32 %v1145_v18  ;;  %v1089_v37 = vmax.f32 %v1057_v55, 0.0  ;;  %v1090_v49 = vmax.f32 %v1058_v2, 0.0  ;;  %v1225_v47 = vmul.f32 4.0, %v2260_v38 }
 0x166   :  { %v1146_v10 = vadd.f32 0.5, %v1114_v3  ;;  %v2339_v54 = vmul.f32 0.25, %v1170_v15  ;;  %v2341_v43 = vmul.f32 0.25, %v1183_v4  ;;  %v1184_v56 = vfloor.f32 %v1152_v34 }
 0x167   :  { %v1255_v48 = vmax.f32 %v1223_v53, 0.0  ;;  %v1121_v36 = vmin.f32 %v1089_v37, 4.0  ;;  %v1122_v42 = vmin.f32 %v1090_v49, 4.0  ;;  %v1257_v35 = vmax.f32 %v1225_v47, 0.0 }
 0x168   :  { %v1178_v52 = vfloor.f32 %v1146_v10  ;;  %v2343_v41 = vmul.f32 0.25, %v1177_v45  ;;  %v1224_v62 = vmul.f32 4.0, %v2262_v50  ;;  %v1226_v39 = vmul.f32 4.0, %v2267_v63 }
 0x169   :  { %v1287_v60 = vmin.f32 %v1255_v48, 4.0  ;;  %v2347_v40 = vmul.f32 0.25, %v1184_v56  ;;  %v1153_v38 = vadd.f32 0.5, %v1121_v36  ;;  %v2349_v32 = vadd.f32 0.5, %v1122_v42 }
 0x16a   :  { %v1289_v27 = vmin.f32 %v1257_v35, 4.0  ;;  %v1256_v22 = vmax.f32 %v1224_v62, 0.0  ;;  %v1258_v33 = vmax.f32 %v1226_v39, 0.0  ;;  %v1231_v16 = vmul.f32 4.0, %v2270_v23 }
 0x16b   :  { %v1319_v1 = vadd.f32 0.5, %v1287_v60  ;;  %v2352_v8 = vmul.f32 0.25, %v1178_v52  ;;  %v1185_v51 = vfloor.f32 %v1153_v38  ;;  %v1233_v15 = vmul.f32 4.0, %v2272_v59 }
 0x16c   :  { %v1321_v6 = vadd.f32 0.5, %v1289_v27  ;;  %v1288_v7 = vmin.f32 %v1256_v22, 4.0  ;;  %v1290_v63 = vmin.f32 %v1258_v33, 4.0  ;;  %v1263_v18 = vmax.f32 %v1231_v16, 0.0 }
 0x16d   :  { %v1351_v50 = vfloor.f32 %v1319_v1  ;;  %v2355_v30 = vmul.f32 0.25, %v1185_v51  ;;  %v1186_v3 = vfloor.f32 %v2349_v32  ;;  %v1265_v2 = vmax.f32 %v1233_v15, 0.0 }
 0x16e   :  { %v1353_v55 = vfloor.f32 %v1321_v6  ;;  %v1320_v45 = vadd.f32 0.5, %v1288_v7  ;;  %v1322_v34 = vadd.f32 0.5, %v1290_v63  ;;  %v1295_v23 = vmin.f32 %v1263_v18, 4.0 }
 0x16f   :  { %v1383_v4 = vmul.f32 0.25, %v1351_v50  ;;  %v1297_v10 = vmin.f32 %v1265_v2, 4.0  ;;  %v1232_v37 = vmul.f32 4.0, %v2274_v20  ;;  %v1234_v59 = vmul.f32 4.0, %v2278_v13 }
 0x170   :  { %v2358_v53 = vmul.f32 0.25, %v1353_v55  ;;  %v1352_v49 = vfloor.f32 %v1320_v45  ;;  %v1354_v47 = vfloor.f32 %v1322_v34  ;;  %v1327_v56 = vadd.f32 0.5, %v1295_v23 }
 0x171   :  { %v1239_v48 = vmul.f32 4.0, %v2285_v17  ;;  %v1329_v52 = vadd.f32 0.5, %v1297_v10  ;;  %v1264_v36 = vmax.f32 %v1232_v37, 0.0  ;;  %v1266_v42 = vmax.f32 %v1234_v59, 0.0 }
 0x172   :  { %v1241_v35 = vmul.f32 4.0, %v2288_v12  ;;  %v1384_v60 = vmul.f32 0.25, %v1352_v49  ;;  %v1386_v62 = vmul.f32 0.25, %v1354_v47  ;;  %v1359_v39 = vfloor.f32 %v1327_v56 }
 0x173   :  { %v1271_v38 = vmax.f32 %v1239_v48, 0.0  ;;  %v1361_v27 = vfloor.f32 %v1329_v52  ;;  %v1296_v1 = vmin.f32 %v1264_v36, 4.0  ;;  %v1298_v22 = vmin.f32 %v1266_v42, 4.0 }
 0x174   :  { %v1273_v20 = vmax.f32 %v1241_v35, 0.0  ;;  %v1391_v33 = vmul.f32 0.25, %v1359_v39  ;;  %v1240_v16 = vmul.f32 4.0, %v2290_v28  ;;  %v1242_v51 = vmul.f32 4.0, %v2292_v26 }
 0x175   :  { %v1303_v13 = vmin.f32 %v1271_v38, 4.0  ;;  %v1393_v17 = vmul.f32 0.25, %v1361_v27  ;;  %v1328_v6 = vadd.f32 0.5, %v1296_v1  ;;  %v1330_v15 = vadd.f32 0.5, %v1298_v22 }
 0x176   :  { %v1305_v50 = vmin.f32 %v1273_v20, 4.0  ;;  %v1272_v12 = vmax.f32 %v1240_v16, 0.0  ;;  %v1274_v63 = vmax.f32 %v1242_v51, 0.0  ;;  %v1247_v18 = vmul.f32 4.0, %v2295_v5 }
 0x177   :  { %v1335_v7 = vadd.f32 0.5, %v1303_v13  ;;  %v1360_v55 = vfloor.f32 %v1328_v6  ;;  %v1362_v2 = vfloor.f32 %v1330_v15  ;;  %v1249_v34 = vmul.f32 4.0, %v2297_v11 }
 0x178   :  { %v1337_v45 = vadd.f32 0.5, %v1305_v50  ;;  %v1304_v10 = vmin.f32 %v1272_v12, 4.0  ;;  %v1306_v37 = vmin.f32 %v1274_v63, 4.0  ;;  %v1279_v28 = vmax.f32 %v1247_v18, 0.0 }
 0x179   :  { %v1367_v23 = vfloor.f32 %v1335_v7  ;;  %v1392_v59 = vmul.f32 0.25, %v1360_v55  ;;  %v1394_v26 = vmul.f32 0.25, %v1362_v2  ;;  %v1281_v47 = vmax.f32 %v1249_v34, 0.0 }
 0x17a   :  { %v1369_v49 = vfloor.f32 %v1337_v45  ;;  %v1336_v48 = vadd.f32 0.5, %v1304_v10  ;;  %v1338_v52 = vadd.f32 0.5, %v1306_v37  ;;  %v1311_v36 = vmin.f32 %v1279_v28, 4.0 }
 0x17b   :  { %v1399_v56 = vmul.f32 0.25, %v1367_v23  ;;  %v1313_v35 = vmin.f32 %v1281_v47, 4.0  ;;  %v1248_v5 = vmul.f32 4.0, %v2299_v24  ;;  %v1250_v39 = vmul.f32 4.0, %v2301_v46 }
 0x17c   :  { %v1401_v42 = vmul.f32 0.25, %v1369_v49  ;;  %v1368_v38 = vfloor.f32 %v1336_v48  ;;  %v1370_v11 = vfloor.f32 %v1338_v52  ;;  %v1343_v27 = vadd.f32 0.5, %v1311_v36  ;;  %v2592_v49 = vld [vmem:[#allocation3_spill] sm:$0xff]  ;;  %v2593_v52 = vld [vmem:[#allocation4_spill] sm:$0xff] }
 0x17d   :  { %v1415_v1 = vmul.f32 %v1383_v4, %v2309_v61  ;;  %v1345_v22 = vadd.f32 0.5, %v1313_v35  ;;  %v1280_v20 = vmax.f32 %v1248_v5, 0.0  ;;  %v1282_v13 = vmax.f32 %v1250_v39, 0.0  ;;  %v2594_v39 = vld [vmem:[#allocation5_spill] sm:$0xff] }
 0x17e   :  { %v1416_v16 = vmul.f32 %v1384_v60, %v2315_v29  ;;  %v1400_v51 = vmul.f32 0.25, %v1368_v38  ;;  %v1402_v6 = vmul.f32 0.25, %v1370_v11  ;;  %v1375_v15 = vfloor.f32 %v1343_v27 }
 0x17f   :  { %v1417_v50 = vmul.f32 %v2358_v53, %v2319_v25  ;;  %v1377_v7 = vfloor.f32 %v1345_v22  ;;  %v1312_v24 = vmin.f32 %v1280_v20, 4.0  ;;  %v1314_v12 = vmin.f32 %v1282_v13, 4.0  ;;  %v2596_v13 = vld [vmem:[#allocation7_spill] sm:$0xff] }
 0x180   :  { %v1548_v46 = vadd.f32 %v1416_v16, %v1415_v1  ;;  %v1407_v63 = vmul.f32 0.25, %v1375_v15  ;;  %v1418_v18 = vmul.f32 %v1386_v62, %v2327_v21  ;;  %v1423_v61 = vmul.f32 %v1391_v33, %v2317_v19  ;;  %v2595_v1 = vld [vmem:[#allocation6_spill] sm:$0xff] }
 0x181   :  { %v1424_v4 = vmul.f32 %v1392_v59, %v2323_v44  ;;  %v1409_v55 = vmul.f32 0.25, %v1377_v7  ;;  %v1344_v2 = vadd.f32 0.5, %v1312_v24  ;;  %v1346_v29 = vadd.f32 0.5, %v1314_v12 }
 0x182   :  { %1549 = vadd.xlane.f32.xlu0 %v1548_v46  ;;  %v1425_v60 = vmul.f32 %v1393_v17, %v2331_v9  ;;  %v1601_v45 = vadd.f32 %v1418_v18, %v1417_v50  ;;  %v1426_v25 = vmul.f32 %v1394_v26, %v2339_v54  ;;  %v1431_v53 = vmul.f32 %v1399_v56, %v2329_v57 }
 0x183   :  { %v1551_v34 = vadd.f32 %v1424_v4, %v1423_v61  ;;  %v1376_v23 = vfloor.f32 %v1344_v2  ;;  %v1378_v10 = vfloor.f32 %v1346_v29  ;;  %v1432_v21 = vmul.f32 %v1400_v51, %v2333_v0  ;;  %v2597_v2 = vld [vmem:[#allocation8_spill] sm:$0xff] }
 0x184   :  { %v1433_v19 = vmul.f32 %v1401_v42, %v2343_v41  ;;  %v1604_v44 = vadd.f32 %v1426_v25, %v1425_v60  ;;  %v1434_v62 = vmul.f32 %v1402_v6, %v2352_v8  ;;  %v1439_v33 = vmul.f32 %v1407_v63, %v2341_v43 }
 0x185   :  { %1552 = vadd.xlane.f32.xlu1 %v1551_v34  ;;  %v1441_v9 = vmul.f32 %v1409_v55, %v2355_v30  ;;  %v1218_v17 = vmul.f32 0.25, %v1186_v3  ;;  %v1408_v54 = vmul.f32 0.25, %v1376_v23  ;;  %v1410_v37 = vmul.f32 0.25, %v1378_v10  ;;  %v2591_v30 = vld [vmem:[#allocation2_spill] sm:$0xff] }
 0x186   :  { %1602 = vadd.xlane.f32.xlu0 %v1601_v45  ;;  %v1554_v57 = vadd.f32 %v1432_v21, %v1431_v53  ;;  %v1607_v28 = vadd.f32 %v1434_v62, %v1433_v19  ;;  %v835_v43 = vmul.f32 4.0, %v2067_v14  ;;  %v836_v32 = vmul.f32 4.0, %v2069_v31 }
 0x187   :  { %v1440_v0 = vmul.f32 %v1408_v54, %v2347_v40  ;;  %v1442_v59 = vmul.f32 %v1410_v37, %v1218_v17  ;;  %v837_v8 = vmul.f32 4.0, %v2071_v58  ;;  %v838_v3 = vmul.f32 4.0, %v2591_v30 }
 0x188   :  { %v843_v47 = vmul.f32 4.0, %v2592_v49  ;;  %v867_v56 = vmax.f32 %v835_v43, 0.0  ;;  %v868_v40 = vmax.f32 %v836_v32, 0.0  ;;  %v844_v36 = vmul.f32 4.0, %v2593_v52 }
 0x189   :  { %1605 = vadd.xlane.f32.xlu1 %v1604_v44  ;;  %v1557_v41 = vadd.f32 %v1440_v0, %v1439_v33  ;;  %v1610_v26 = vadd.f32 %v1442_v59, %v1441_v9  ;;  %v869_v48 = vmax.f32 %v837_v8, 0.0  ;;  %v870_v42 = vmax.f32 %v838_v3, 0.0  ;;  %v2598_v3 = vld [vmem:[#allocation11_spill] sm:$0xff] }
 0x18a   :  { %1555 = vadd.xlane.f32.xlu0 %v1554_v57  ;;  %v875_v35 = vmax.f32 %v843_v47, 0.0  ;;  %v899_v5 = vmin.f32 %v867_v56, 4.0  ;;  %v845_v38 = vmul.f32 4.0, %v2594_v39  ;;  %v900_v11 = vmin.f32 %v868_v40, 4.0  ;;  %v2599_v47 = vld [vmem:[#allocation9_spill] sm:$0xff] }
 0x18b   :  { %v901_v14 = vmin.f32 %v869_v48, 4.0  ;;  %v876_v27 = vmax.f32 %v844_v36, 0.0  ;;  %v902_v31 = vmin.f32 %v870_v42, 4.0  ;;  %v846_v58 = vmul.f32 4.0, %v2595_v1 }
 0x18c   :  { %v907_v22 = vmin.f32 %v875_v35, 4.0  ;;  %v931_v20 = vadd.f32 0.5, %v899_v5  ;;  %v851_v16 = vmul.f32 4.0, %v2596_v13  ;;  %v877_v51 = vmax.f32 %v845_v38, 0.0  ;;  %v2600_v5 = vld [vmem:[#allocation12_spill] sm:$0xff]  ;;  %v2601_v38 = vld [vmem:[#allocation10_spill] sm:$0xff] }
 0x18d   :  { %1558 = vadd.xlane.f32.xlu1 %v1557_v41  ;;  %v932_v6 = vadd.f32 0.5, %v900_v11  ;;  %v933_v15 = vadd.f32 0.5, %v901_v14  ;;  %v908_v50 = vmin.f32 %v876_v27, 4.0  ;;  %v934_v7 = vadd.f32 0.5, %v902_v31 }
 0x18e   :  { %1608 = vadd.xlane.f32.xlu0 %v1607_v28  ;;  %v878_v24 = vmax.f32 %v846_v58, 0.0  ;;  %v939_v46 = vadd.f32 0.5, %v907_v22  ;;  %v963_v18 = vfloor.f32 %v931_v20  ;;  %v883_v61 = vmax.f32 %v851_v16, 0.0 }
 0x18f   :  { %v909_v4 = vmin.f32 %v877_v51, 4.0  ;;  %v964_v55 = vfloor.f32 %v932_v6  ;;  %v852_v29 = vmul.f32 4.0, %v2597_v2  ;;  %v965_v45 = vfloor.f32 %v933_v15 }
 0x190   :  { %v940_v34 = vadd.f32 0.5, %v908_v50  ;;  %v966_v25 = vfloor.f32 %v934_v7  ;;  %v910_v53 = vmin.f32 %v878_v24, 4.0  ;;  %v971_v23 = vfloor.f32 %v939_v46 }
 0x191   :  { %1611 = vadd.xlane.f32.xlu1 %v1610_v26  ;;  %v995_v21 = vmul.f32 0.25, %v963_v18  ;;  %v915_v19 = vmin.f32 %v883_v61, 4.0  ;;  %v941_v44 = vadd.f32 0.5, %v909_v4  ;;  %v996_v33 = vmul.f32 0.25, %v964_v55  ;;  %v2602_v61 = vld [vmem:[#allocation13_spill] sm:$0xff] }
 0x192   :  { %v884_v9 = vmax.f32 %v852_v29, 0.0  ;;  %v997_v37 = vmul.f32 0.25, %v965_v45  ;;  %v972_v57 = vfloor.f32 %v940_v34  ;;  %v998_v28 = vmul.f32 0.25, %v966_v25  ;;  %v2603_v25 = vld [vmem:[#allocation14_spill] sm:$0xff] }
 0x193   :  { %v942_v0 = vadd.f32 0.5, %v910_v53  ;;  %v2398_v41 = vmul.f32 0.25, %v971_v23  ;;  %v947_v8 = vadd.f32 0.5, %v915_v19  ;;  %v973_v30 = vfloor.f32 %v941_v44 }
 0x194   :  { %v859_v49 = vmul.f32 4.0, %v2598_v3  ;;  %v853_v56 = vmul.f32 4.0, %v2599_v47  ;;  %v916_v40 = vmin.f32 %v884_v9, 4.0  ;;  %v2402_v42 = vmul.f32 0.25, %v972_v57 }
 0x195   :  { %v974_v35 = vfloor.f32 %v942_v0  ;;  %v860_v39 = vmul.f32 4.0, %v2600_v5  ;;  %v854_v11 = vmul.f32 4.0, %v2601_v38  ;;  %v1005_v22 = vmul.f32 0.25, %v973_v30 }
 0x196   :  { %v891_v20 = vmax.f32 %v859_v49, 0.0  ;;  %v885_v13 = vmax.f32 %v853_v56, 0.0  ;;  %v979_v51 = vfloor.f32 %v947_v8  ;;  %v948_v6 = vadd.f32 0.5, %v916_v40 }
 0x197   :  { %v892_v24 = vmax.f32 %v860_v39, 0.0  ;;  %v1006_v18 = vmul.f32 0.25, %v974_v35  ;;  %v861_v4 = vmul.f32 4.0, %v2602_v61  ;;  %v862_v53 = vmul.f32 4.0, %v2603_v25 }
 0x198   :  { %v923_v29 = vmin.f32 %v891_v20, 4.0  ;;  %v980_v19 = vfloor.f32 %v948_v6 }
 0x199   :  { %v924_v9 = vmin.f32 %v892_v24, 4.0  ;;  %v894_v49 = vmax.f32 %v862_v53, 0.0 }
 0x19a   :  { %v955_v30 = vadd.f32 0.5, %v923_v29 }
 0x1ca   :  { %v1445_v12 = vpop.xlane.xlu0 %1444 }
 0x1cb   :  { %v1455_v63 = vmul.f32 4.0, %v1445_v12  ;;  %v886_v12 = vmax.f32 %v854_v11, 0.0 }
 0x1cd   :  { %v1459_v60 = vmax.f32 %v1455_v63, 0.0  ;;  %v918_v44 = vmin.f32 %v886_v12, 4.0 }
 0x1cf   :  { %v1463_v10 = vmin.f32 %v1459_v60, 4.0  ;;  %v917_v60 = vmin.f32 %v885_v13, 4.0  ;;  %v987_v13 = vfloor.f32 %v955_v30 }
 0x1d0   :  { %v1500_v62 = vpop.xlane.xlu1 %1499 }
 0x1d1   :  { %v1467_v17 = vadd.f32 0.5, %v1463_v10  ;;  %v1508_v54 = vmul.f32 4.0, %v1500_v62  ;;  %v949_v3 = vadd.f32 0.5, %v917_v60 }
 0x1d3   :  { %v1497_v59 = vpop.xlane.xlu0 %1496  ;;  %v1471_v26 = vfloor.f32 %v1467_v17  ;;  %v1512_v43 = vmax.f32 %v1508_v54, 0.0  ;;  %v893_v17 = vmax.f32 %v861_v4, 0.0 }
 0x1d4   :  { %v1507_v32 = vmul.f32 4.0, %v1497_v59  ;;  %v1011_v59 = vmul.f32 0.25, %v979_v51 }
 0x1d5   :  { %v1475_v48 = vmul.f32 0.5, %v1471_v26  ;;  %v1516_v52 = vmin.f32 %v1512_v43, 4.0 }
 0x1d6   :  { %v1511_v36 = vmax.f32 %v1507_v32, 0.0 }
 0x1d7   :  { %v1479_v14 = vadd.f32 %v1475_v48, %v995_v21  ;;  %v1480_v27 = vadd.f32 %v1475_v48, %v996_v33  ;;  %v1520_v31 = vadd.f32 0.5, %v1516_v52  ;;  %v1012_v48 = vmul.f32 0.25, %v980_v19 }
 0x1d8   :  { %v1515_v1 = vmin.f32 %v1511_v36, 4.0  ;;  %v1448_v58 = vpop.xlane.xlu0 %1447  ;;  %v956_v52 = vadd.f32 0.5, %v924_v9  ;;  %v925_v36 = vmin.f32 %v893_v17, 4.0  ;;  %v2605_v17 = vld [vmem:[#allocation16_spill] sm:$0xff] }
 0x1d9   :  { %v1456_v16 = vmul.f32 4.0, %v1448_v58  ;;  %1487 = vst [vmem:[%s2558_s2] sm:$0xff] %v1479_v14  ;;  %1488 = vst [vmem:[%s2558_s2 + $0x8] sm:$0xff] %v1480_v27  ;;  %v1524_v15 = vfloor.f32 %v1520_v31  ;;  %v981_v14 = vfloor.f32 %v949_v3  ;;  %v926_v27 = vmin.f32 %v894_v49, 4.0  ;;  %v2610_v49 = vld [vmem:[#allocation23_spill] sm:$0xff] }
 0x1da   :  { %v1519_v50 = vadd.f32 0.5, %v1515_v1  ;;  %v1451_v7 = vpop.xlane.xlu1 %1450  ;;  %v957_v6 = vadd.f32 0.5, %v925_v36 }
 0x1db   :  { %v1460_v46 = vmax.f32 %v1456_v16, 0.0  ;;  %v1457_v63 = vmul.f32 4.0, %v1451_v7  ;;  %v1528_v55 = vmul.f32 0.5, %v1524_v15  ;;  %v1013_v12 = vmul.f32 0.25, %v981_v14 }
 0x1dc   :  { %v1523_v2 = vfloor.f32 %v1519_v50  ;;  %v958_v50 = vadd.f32 0.5, %v926_v27 }
 0x1dd   :  { %v1464_v45 = vmin.f32 %v1460_v46, 4.0  ;;  %v1461_v34 = vmax.f32 %v1457_v63, 0.0  ;;  %v1533_v23 = vadd.f32 %v1528_v55, %v1005_v22  ;;  %v1534_v10 = vadd.f32 %v1528_v55, %v1006_v18 }
 0x1de   :  { %v1527_v21 = vmul.f32 0.5, %v1523_v2  ;;  %v1019_v18 = vmul.f32 0.25, %v987_v13  ;;  %v989_v2 = vfloor.f32 %v957_v6 }
 0x1df   :  { %v1468_v62 = vadd.f32 0.5, %v1464_v45  ;;  %v1465_v33 = vmin.f32 %v1461_v34, 4.0  ;;  %1732 = vst [vmem:[%s2558_s2 + $0x50] sm:$0xff] %v1533_v23  ;;  %1733 = vst [vmem:[%s2558_s2 + $0x58] sm:$0xff] %v1534_v10  ;;  %v1503_v0 = vpop.xlane.xlu0 %1502  ;;  %v990_v45 = vfloor.f32 %v958_v50 }
 0x1e0   :  { %v1531_v54 = vadd.f32 %v1527_v21, %v997_v37  ;;  %v1532_v57 = vadd.f32 %v1527_v21, %v998_v28  ;;  %v1509_v32 = vmul.f32 4.0, %v1503_v0  ;;  %v1454_v8 = vpop.xlane.xlu1 %1453  ;;  %v950_v37 = vadd.f32 0.5, %v918_v44 }
 0x1e1   :  { %v1472_v26 = vfloor.f32 %v1468_v62  ;;  %v1469_v43 = vadd.f32 0.5, %v1465_v33  ;;  %v1458_v47 = vmul.f32 4.0, %v1454_v8  ;;  %v1021_v10 = vmul.f32 0.25, %v989_v2  ;;  %v2604_v33 = vld [vmem:[#allocation15_spill] sm:$0xff]  ;;  %v2609_v8 = vld [vmem:[#allocation18_spill] sm:$0xff] }
 0x1e2   :  { %1730 = vst [vmem:[%s2558_s2 + $0x40] sm:$0xff] %v1531_v54  ;;  %1731 = vst [vmem:[%s2558_s2 + $0x48] sm:$0xff] %v1532_v57  ;;  %v1513_v40 = vmax.f32 %v1509_v32, 0.0  ;;  %v982_v1 = vfloor.f32 %v950_v37  ;;  %v1022_v21 = vmul.f32 0.25, %v990_v45  ;;  %v839_v9 = vmul.f32 4.0, %v2604_v33  ;;  %v2606_v57 = vld [vmem:[#allocation19_spill] sm:$0xff] }
 0x1e3   :  { %v1476_v28 = vmul.f32 0.5, %v1472_v26  ;;  %v1473_v56 = vfloor.f32 %v1469_v43  ;;  %v1462_v35 = vmax.f32 %v1458_v47, 0.0  ;;  %v840_v54 = vmul.f32 4.0, %v2605_v17  ;;  %v2608_v43 = vld [vmem:[#allocation20_spill] sm:$0xff] }
 0x1e4   :  { %v1517_v11 = vmin.f32 %v1513_v40, 4.0  ;;  %v1014_v46 = vmul.f32 0.25, %v982_v1  ;;  %v847_v0 = vmul.f32 4.0, %v2606_v57  ;;  %v848_v32 = vmul.f32 4.0, %v2608_v43  ;;  %v2617_v57 = vld [vmem:[#allocation26_spill] sm:$0xff] }
 0x1e5   :  { %v1481_v5 = vadd.f32 %v1476_v28, %v2398_v41  ;;  %v1482_v39 = vadd.f32 %v1476_v28, %v2402_v42  ;;  %v1477_v38 = vmul.f32 0.5, %v1473_v56  ;;  %v1466_v31 = vmin.f32 %v1462_v35, 4.0  ;;  %v1506_v41 = vpop.xlane.xlu1 %1505  ;;  %v2611_v28 = vld [vmem:[#allocation21_spill] sm:$0xff] }
 0x1e6   :  { %v1521_v20 = vadd.f32 0.5, %v1517_v11  ;;  %v988_v42 = vfloor.f32 %v956_v52  ;;  %v1510_v51 = vmul.f32 4.0, %v1506_v41  ;;  %v842_v30 = vmul.f32 4.0, %v2609_v8  ;;  %v2612_v52 = vld [vmem:[#allocation24_spill] sm:$0xff] }
 0x1e7   :  { %1489 = vst [vmem:[%s2558_s2 + $0x10] sm:$0xff] %v1481_v5  ;;  %1490 = vst [vmem:[%s2558_s2 + $0x18] sm:$0xff] %v1482_v39  ;;  %v1483_v58 = vadd.f32 %v1477_v38, %v1011_v59  ;;  %v1484_v22 = vadd.f32 %v1477_v38, %v1012_v48  ;;  %v1470_v16 = vadd.f32 0.5, %v1466_v31  ;;  %v2607_v59 = vld [vmem:[#allocation17_spill] sm:$0xff]  ;;  %v871_v3 = vmax.f32 %v839_v9, 0.0  ;;  %v2613_v39 = vld [vmem:[#allocation22_spill] sm:$0xff] }
 0x1e8   :  { %v1525_v15 = vfloor.f32 %v1521_v20  ;;  %v1514_v24 = vmax.f32 %v1510_v51, 0.0  ;;  %v1020_v61 = vmul.f32 0.25, %v988_v42  ;;  %v841_v26 = vmul.f32 4.0, %v2607_v59  ;;  %v2614_v51 = vld [vmem:[#allocation27_spill] sm:$0xff] }
 0x1e9   :  { %1491 = vst [vmem:[%s2558_s2 + $0x20] sm:$0xff] %v1483_v58  ;;  %1492 = vst [vmem:[%s2558_s2 + $0x28] sm:$0xff] %v1484_v22  ;;  %v1474_v7 = vfloor.f32 %v1470_v16  ;;  %v855_v47 = vmul.f32 4.0, %v2610_v49  ;;  %v872_v37 = vmax.f32 %v840_v54, 0.0  ;;  %v849_v56 = vmul.f32 4.0, %v2611_v28 }
 0x1ea   :  { %v1529_v63 = vmul.f32 0.5, %v1525_v15  ;;  %v1518_v55 = vmin.f32 %v1514_v24, 4.0  ;;  %v879_v40 = vmax.f32 %v847_v0, 0.0  ;;  %v873_v48 = vmax.f32 %v841_v26, 0.0 }
 0x1eb   :  { %v1478_v4 = vmul.f32 0.5, %v1474_v7  ;;  %v856_v36 = vmul.f32 4.0, %v2612_v52  ;;  %v880_v35 = vmax.f32 %v848_v32, 0.0  ;;  %v874_v5 = vmax.f32 %v842_v30, 0.0  ;;  %v2615_v7 = vld [vmem:[#allocation25_spill] sm:$0xff] }
 0x1ec   :  { %v1535_v29 = vadd.f32 %v1529_v63, %v1013_v12  ;;  %v1536_v60 = vadd.f32 %v1529_v63, %v1014_v46  ;;  %v1522_v53 = vadd.f32 0.5, %v1518_v55  ;;  %v850_v38 = vmul.f32 4.0, %v2613_v39 }
 0x1ed   :  { %v1485_v34 = vadd.f32 %v1478_v4, %v1019_v18  ;;  %v1486_v25 = vadd.f32 %v1478_v4, %v1020_v61  ;;  %v903_v11 = vmin.f32 %v871_v3, 4.0  ;;  %v887_v14 = vmax.f32 %v855_v47, 0.0  ;;  %v2616_v18 = vld [vmem:[#allocation28_spill] sm:$0xff] }
 0x1ee   :  { %1734 = vst [vmem:[%s2558_s2 + $0x60] sm:$0xff] %v1535_v29  ;;  %1735 = vst [vmem:[%s2558_s2 + $0x68] sm:$0xff] %v1536_v60  ;;  %v1526_v23 = vfloor.f32 %v1522_v53  ;;  %v904_v27 = vmin.f32 %v872_v37, 4.0  ;;  %v881_v31 = vmax.f32 %v849_v56, 0.0  ;;  %v911_v1 = vmin.f32 %v879_v40, 4.0 }
 0x1ef   :  { %1493 = vst [vmem:[%s2558_s2 + $0x30] sm:$0xff] %v1485_v34  ;;  %1494 = vst [vmem:[%s2558_s2 + $0x38] sm:$0xff] %v1486_v25  ;;  %v905_v58 = vmin.f32 %v873_v48, 4.0  ;;  %v888_v22 = vmax.f32 %v856_v36, 0.0  ;;  %v912_v20 = vmin.f32 %v880_v35, 4.0  ;;  %v906_v41 = vmin.f32 %v874_v5, 4.0 }
 0x1f0   :  { %v1530_v19 = vmul.f32 0.5, %v1526_v23  ;;  %v882_v13 = vmax.f32 %v850_v38, 0.0  ;;  %v935_v42 = vadd.f32 0.5, %v903_v11  ;;  %v919_v16 = vmin.f32 %v887_v14, 4.0 }
 0x1f1   :  { %v863_v6 = vmul.f32 4.0, %v2614_v51  ;;  %v936_v15 = vadd.f32 0.5, %v904_v27  ;;  %v913_v50 = vmin.f32 %v881_v31, 4.0  ;;  %v857_v24 = vmul.f32 4.0, %v2615_v7 }
 0x1f2   :  { %v1537_v44 = vadd.f32 %v1530_v19, %v1021_v10  ;;  %v1538_v62 = vadd.f32 %v1530_v19, %v1022_v21  ;;  %v943_v12 = vadd.f32 0.5, %v911_v1  ;;  %v937_v46 = vadd.f32 0.5, %v905_v58  ;;  %v2618_v58 = vld [vmem:[#allocation29_spill] sm:$0xff] }
 0x1f3   :  { %v920_v63 = vmin.f32 %v888_v22, 4.0  ;;  %v864_v61 = vmul.f32 4.0, %v2616_v18  ;;  %v944_v4 = vadd.f32 0.5, %v912_v20  ;;  %v938_v55 = vadd.f32 0.5, %v906_v41 }
 0x1f4   :  { %1736 = vst [vmem:[%s2558_s2 + $0x70] sm:$0xff] %v1537_v44  ;;  %1737 = vst [vmem:[%s2558_s2 + $0x78] sm:$0xff] %v1538_v62  ;;  %v914_v2 = vmin.f32 %v882_v13, 4.0  ;;  %v967_v29 = vfloor.f32 %v935_v42  ;;  %v951_v60 = vadd.f32 0.5, %v919_v16  ;;  %v895_v45 = vmax.f32 %v863_v6, 0.0  ;;  %v2619_v13 = vld [vmem:[#allocation30_spill] sm:$0xff] }
 0x1f5   :  { %v968_v34 = vfloor.f32 %v936_v15  ;;  %v945_v25 = vadd.f32 0.5, %v913_v50  ;;  %v889_v53 = vmax.f32 %v857_v24, 0.0  ;;  %v975_v23 = vfloor.f32 %v943_v12 }
 0x1f6   :  { %v969_v10 = vfloor.f32 %v937_v46  ;;  %v952_v21 = vadd.f32 0.5, %v920_v63  ;;  %v896_v19 = vmax.f32 %v864_v61, 0.0  ;;  %v976_v44 = vfloor.f32 %v944_v4 }
 0x1f7   :  { %v970_v62 = vfloor.f32 %v938_v55  ;;  %v946_v33 = vadd.f32 0.5, %v914_v2  ;;  %v999_v9 = vmul.f32 0.25, %v967_v29  ;;  %v983_v17 = vfloor.f32 %v951_v60 }
 0x1f8   :  { %v927_v54 = vmin.f32 %v895_v45, 4.0  ;;  %v858_v0 = vmul.f32 4.0, %v2617_v57  ;;  %v1000_v26 = vmul.f32 0.25, %v968_v34  ;;  %v977_v43 = vfloor.f32 %v945_v25 }
 0x1f9   :  { %v921_v32 = vmin.f32 %v889_v53, 4.0  ;;  %v2472_v30 = vmul.f32 0.25, %v975_v23  ;;  %v2474_v3 = vmul.f32 0.25, %v969_v10  ;;  %v984_v49 = vfloor.f32 %v952_v21 }
 0x1fa   :  { %v928_v47 = vmin.f32 %v896_v19, 4.0  ;;  %v1008_v37 = vmul.f32 0.25, %v976_v44  ;;  %v2476_v28 = vmul.f32 0.25, %v970_v62  ;;  %v978_v56 = vfloor.f32 %v946_v33 }
 0x1fb   :  { %v2478_v52 = vmul.f32 0.25, %v983_v17  ;;  %v2480_v36 = vadd.f32 0.5, %v927_v54  ;;  %v890_v35 = vmax.f32 %v858_v0, 0.0  ;;  %v2482_v38 = vmul.f32 0.25, %v977_v43 }
 0x1fc   :  { %v2484_v11 = vadd.f32 0.5, %v921_v32  ;;  %v2486_v31 = vmul.f32 0.25, %v984_v49  ;;  %v2488_v1 = vadd.f32 0.5, %v928_v47  ;;  %v865_v22 = vmul.f32 4.0, %v2618_v58 }
 0x1fd   :  { %v2491_v41 = vmul.f32 0.25, %v978_v56  ;;  %v866_v42 = vmul.f32 4.0, %v2619_v13  ;;  %v991_v15 = vfloor.f32 %v2480_v36  ;;  %v922_v50 = vmin.f32 %v890_v35, 4.0 }
 0x1fe   :  { %v985_v46 = vfloor.f32 %v2484_v11  ;;  %v992_v4 = vfloor.f32 %v2488_v1  ;;  %v897_v55 = vmax.f32 %v865_v22, 0.0 }
 0x1ff   :  { %v898_v60 = vmax.f32 %v866_v42, 0.0  ;;  %v954_v23 = vadd.f32 0.5, %v922_v50 }
 0x200   :  { %v929_v32 = vmin.f32 %v897_v55, 4.0 }
 0x202   :  { %v961_v58 = vadd.f32 0.5, %v929_v32 }
 0x20f   :  { %v1550_v59 = vpop.xlane.xlu0 %1549 }
 0x210   :  { %v1560_v8 = vmul.f32 4.0, %v1550_v59 }
 0x212   :  { %v1564_v40 = vmax.f32 %v1560_v8, 0.0  ;;  %v1553_v48 = vpop.xlane.xlu1 %1552  ;;  %v930_v8 = vmin.f32 %v898_v60, 4.0 }
 0x213   :  { %v1603_v5 = vpop.xlane.xlu0 %1602  ;;  %v1561_v39 = vmul.f32 4.0, %v1553_v48 }
 0x214   :  { %v1568_v14 = vmin.f32 %v1564_v40, 4.0  ;;  %v1613_v27 = vmul.f32 4.0, %v1603_v5  ;;  %v962_v22 = vadd.f32 0.5, %v930_v8 }
 0x215   :  { %v1565_v20 = vmax.f32 %v1561_v39, 0.0 }
 0x216   :  { %v1572_v16 = vadd.f32 0.5, %v1568_v14  ;;  %v1617_v51 = vmax.f32 %v1613_v27, 0.0  ;;  %v1606_v6 = vpop.xlane.xlu1 %1605  ;;  %v986_v27 = vfloor.f32 %v954_v23 }
 0x217   :  { %v1569_v7 = vmin.f32 %v1565_v20, 4.0  ;;  %v1614_v24 = vmul.f32 4.0, %v1606_v6  ;;  %v1556_v12 = vpop.xlane.xlu0 %1555 }
 0x218   :  { %v1576_v63 = vfloor.f32 %v1572_v16  ;;  %v1621_v18 = vmin.f32 %v1617_v51, 4.0  ;;  %v1562_v61 = vmul.f32 4.0, %v1556_v12  ;;  %v1018_v12 = vmul.f32 0.25, %v986_v27 }
 0x219   :  { %v1573_v2 = vadd.f32 0.5, %v1569_v7  ;;  %v1618_v29 = vmax.f32 %v1614_v24, 0.0  ;;  %v1023_v7 = vmul.f32 0.25, %v991_v15  ;;  %v1017_v24 = vmul.f32 0.25, %v985_v46 }
 0x21a   :  { %v1580_v45 = vmul.f32 0.5, %v1576_v63  ;;  %v1625_v34 = vadd.f32 0.5, %v1621_v18  ;;  %v1566_v25 = vmax.f32 %v1562_v61, 0.0  ;;  %v1559_v53 = vpop.xlane.xlu1 %1558  ;;  %v994_v15 = vfloor.f32 %v962_v22 }
 0x21b   :  { %v1577_v10 = vfloor.f32 %v1573_v2  ;;  %v1622_v21 = vmin.f32 %v1618_v29, 4.0  ;;  %v1609_v19 = vpop.xlane.xlu0 %1608  ;;  %v1563_v44 = vmul.f32 4.0, %v1559_v53 }
 0x21c   :  { %v1584_v62 = vadd.f32 %v1580_v45, %v999_v9  ;;  %v1585_v33 = vadd.f32 %v1580_v45, %v1000_v26  ;;  %v1629_v17 = vfloor.f32 %v1625_v34  ;;  %v1570_v54 = vmin.f32 %v1566_v25, 4.0 }
 0x21d   :  { %v1581_v57 = vmul.f32 0.5, %v1577_v10  ;;  %v1626_v0 = vadd.f32 0.5, %v1622_v21  ;;  %v1615_v59 = vmul.f32 4.0, %v1609_v19  ;;  %v1567_v43 = vmax.f32 %v1563_v44, 0.0 }
 0x21e   :  { %1738 = vst [vmem:[%s2558_s2 + $0x80] sm:$0xff] %v1584_v62  ;;  %1739 = vst [vmem:[%s2558_s2 + $0x88] sm:$0xff] %v1585_v33  ;;  %v1633_v49 = vmul.f32 0.5, %v1629_v17  ;;  %v1574_v47 = vadd.f32 0.5, %v1570_v54  ;;  %v1612_v9 = vpop.xlane.xlu1 %1611  ;;  %v1026_v29 = vmul.f32 0.25, %v994_v15 }
 0x21f   :  { %v1586_v26 = vadd.f32 %v1581_v57, %v2472_v30  ;;  %v1587_v56 = vadd.f32 %v1581_v57, %v1008_v37  ;;  %v1630_v40 = vfloor.f32 %v1626_v0  ;;  %v1619_v48 = vmax.f32 %v1615_v59, 0.0 }
 0x220   :  { %v1637_v35 = vadd.f32 %v1633_v49, %v2474_v3  ;;  %v1638_v5 = vadd.f32 %v1633_v49, %v2476_v28  ;;  %v1578_v39 = vfloor.f32 %v1574_v47  ;;  %v1571_v14 = vmin.f32 %v1567_v43, 4.0 }
 0x221   :  { %1740 = vst [vmem:[%s2558_s2 + $0x90] sm:$0xff] %v1586_v26  ;;  %1741 = vst [vmem:[%s2558_s2 + $0x98] sm:$0xff] %v1587_v56  ;;  %v1634_v1 = vmul.f32 0.5, %v1630_v40  ;;  %v1623_v30 = vmin.f32 %v1619_v48, 4.0  ;;  %v1616_v37 = vmul.f32 4.0, %v1612_v9 }
 0x222   :  { %1746 = vst [vmem:[%s2558_s2 + $0xc0] sm:$0xff] %v1637_v35  ;;  %1747 = vst [vmem:[%s2558_s2 + $0xc8] sm:$0xff] %v1638_v5  ;;  %v1582_v3 = vmul.f32 0.5, %v1578_v39  ;;  %v1575_v28 = vadd.f32 0.5, %v1571_v14 }
 0x223   :  { %v1639_v20 = vadd.f32 %v1634_v1, %v2482_v38  ;;  %v1640_v13 = vadd.f32 %v1634_v1, %v2491_v41  ;;  %v1627_v42 = vadd.f32 0.5, %v1623_v30  ;;  %v1620_v16 = vmax.f32 %v1616_v37, 0.0 }
 0x224   :  { %v1588_v51 = vadd.f32 %v1582_v3, %v2478_v52  ;;  %v1589_v6 = vadd.f32 %v1582_v3, %v2486_v31  ;;  %v1579_v50 = vfloor.f32 %v1575_v28  ;;  %v1024_v52 = vmul.f32 0.25, %v992_v4 }
 0x225   :  { %1748 = vst [vmem:[%s2558_s2 + $0xd0] sm:$0xff] %v1639_v20  ;;  %1749 = vst [vmem:[%s2558_s2 + $0xd8] sm:$0xff] %v1640_v13  ;;  %v1631_v38 = vfloor.f32 %v1627_v42  ;;  %v1624_v41 = vmin.f32 %v1620_v16, 4.0  ;;  %v993_v31 = vfloor.f32 %v961_v58 }
 0x226   :  { %1742 = vst [vmem:[%s2558_s2 + $0xa0] sm:$0xff] %v1588_v51  ;;  %1743 = vst [vmem:[%s2558_s2 + $0xa8] sm:$0xff] %v1589_v6  ;;  %v1583_v36 = vmul.f32 0.5, %v1579_v50 }
 0x227   :  { %v1635_v63 = vmul.f32 0.5, %v1631_v38  ;;  %v1628_v18 = vadd.f32 0.5, %v1624_v41  ;;  %v1025_v4 = vmul.f32 0.25, %v993_v31 }
 0x228   :  { %v1590_v61 = vadd.f32 %v1583_v36, %v1023_v7  ;;  %v1591_v55 = vadd.f32 %v1583_v36, %v1024_v52 }
 0x229   :  { %v1641_v2 = vadd.f32 %v1635_v63, %v1017_v24  ;;  %v1642_v11 = vadd.f32 %v1635_v63, %v1018_v12  ;;  %v1632_v46 = vfloor.f32 %v1628_v18 }
 0x22a   :  { %1744 = vst [vmem:[%s2558_s2 + $0xb0] sm:$0xff] %v1590_v61  ;;  %1745 = vst [vmem:[%s2558_s2 + $0xb8] sm:$0xff] %v1591_v55 }
 0x22b   :  { %1750 = vst [vmem:[%s2558_s2 + $0xe0] sm:$0xff] %v1641_v2  ;;  %1751 = vst [vmem:[%s2558_s2 + $0xe8] sm:$0xff] %v1642_v11  ;;  %v1636_v60 = vmul.f32 0.5, %v1632_v46 }
 0x22d   :  { %v1643_v45 = vadd.f32 %v1636_v60, %v1025_v4  ;;  %v1644_v34 = vadd.f32 %v1636_v60, %v1026_v29 }
 0x22f   :  { %1752 = vst [vmem:[%s2558_s2 + $0xf0] sm:$0xff] %v1643_v45  ;;  %1753 = vst [vmem:[%s2558_s2 + $0xf8] sm:$0xff] %v1644_v34 }

</bundles_post_ra>
